<compile_context>
chip_gen: v5e
topology: v5e:2x2
jax: 0.10.0
libtpu: 0.0.40
codegen_flags: <defaults>
</compile_context>

<pallas_src>
import functools

import jax
import jax.numpy as jnp
from jax import lax
from jax.experimental import pallas as pl
from jax.experimental.pallas import tpu as pltpu


# ----------------------------------------------------------------------------
# Pallas kernel: one Conv2d(k=3, s=2, p=1) layer for a single image.
# ----------------------------------------------------------------------------
def _conv_kernel(x_ref, w_ref, b_ref, o_ref, *, c, ho, wo, relu):
    """x_ref: (1, 2*ho, wo, 2*c)  width-folded NHWC input (bf16)
       w_ref: (9*c, cout)         weights, (kh, kw, cin) row order (bf16)
       b_ref: (1, cout)           bias (f32)
       o_ref: (1, ho*wo, cout)    output, rows in (i, j) order
    """
    g = x_ref[0].astype(jnp.float32)            # (2*ho, wo, 2c)
    h_in = 2 * ho

    even = g[:, :, 0:c]                         # original columns 2m
    odd = g[:, :, c:2 * c]                      # original columns 2m+1
    # Columns 2m-1 (zero at m=0): odd columns shifted right by one folded col.
    odd_l = jnp.concatenate(
        [jnp.zeros((h_in, 1, c), jnp.float32), odd[:, 0:wo - 1, :]], axis=1)

    # Per input row: the three kw-taps pre-concatenated -> (h_in, wo, 3c);
    # prepend one zero row for the top halo (the bottom halo is never read).
    p = jnp.concatenate([odd_l, even, odd], axis=-1)
    p = jnp.concatenate([jnp.zeros((1, wo, 3 * c), jnp.float32), p], axis=0)

    # Output row i uses padded rows 2i, 2i+1, 2i+2 (kh = 0, 1, 2).  Column
    # tiles are assembled purely in VMEM; a single MXU matmul per grid step.
    rows = [
        jnp.concatenate([p[2 * i], p[2 * i + 1], p[2 * i + 2]], axis=-1)
        for i in range(ho)
    ]                                            # each (wo, 9c)
    cols = jnp.concatenate(rows, axis=0)         # (ho*wo, 9c)

    acc = jnp.dot(cols.astype(jnp.bfloat16), w_ref[...],
                  preferred_element_type=jnp.float32)
    acc = acc + b_ref[...]                       # (1, cout) broadcasts over rows
    if relu:
        acc = jnp.maximum(acc, 0.0)
    o_ref[0] = acc.astype(o_ref.dtype)           # store exactly Cout channels


# ----------------------------------------------------------------------------
# pallas_call wrapper for one layer
# ----------------------------------------------------------------------------
def _vmem_limit_bytes(requested):
    cap = 128 << 20
    try:
        cap = int(pltpu.get_tpu_info().vmem_capacity_bytes)
    except Exception:
        pass
    hi = min(100 << 20, (cap * 3) // 4)   # ~48 MiB on v7x, ~96 MiB on v5e/v6e
    return int(min(max(requested, 8 << 20), hi))


def _conv3x3_s2_p1(x_folded, w_mat, b_row, *, c, ho, wo, relu, out_dtype):
    """x_folded: (N, 2*ho, wo, 2*c) bf16  ->  (N, ho*wo, cout)."""
    n = x_folded.shape[0]
    cout = w_mat.shape[1]
    h_in = 2 * ho
    out_item = jnp.dtype(out_dtype).itemsize

    # Double-buffered streamed blocks + resident weights + in-VMEM f32 values.
    vals_f32 = (h_in * wo * 2 * c + (h_in + 1) * wo * 3 * c
                + ho * wo * (9 * c + cout))
    vmem = _vmem_limit_bytes(
        2 * h_in * wo * 2 * c * 2 + 2 * ho * wo * cout * out_item
        + w_mat.size * 2 + cout * 4 + 2 * 4 * vals_f32 + (2 << 20))

    cost = pl.CostEstimate(
        flops=2 * n * ho * wo * 9 * c * cout,
        transcendentals=0,
        bytes_accessed=int(n * h_in * wo * 2 * c * 2 + w_mat.size * 2 + cout * 4
                           + n * ho * wo * cout * out_item),
    )

    kernel = functools.partial(_conv_kernel, c=c, ho=ho, wo=wo, relu=relu)
    return pl.pallas_call(
        kernel,
        out_shape=jax.ShapeDtypeStruct((n, ho * wo, cout), out_dtype),
        grid=(n,),
        in_specs=[
            pl.BlockSpec((1, h_in, wo, 2 * c), lambda i: (i, 0, 0, 0)),
            pl.BlockSpec(w_mat.shape, lambda i: (0, 0)),   # weights: VMEM-resident
            pl.BlockSpec(b_row.shape, lambda i: (0, 0)),   # bias: VMEM-resident
        ],
        out_specs=pl.BlockSpec((1, ho * wo, cout), lambda i: (i, 0, 0)),
        compiler_params=pltpu.CompilerParams(
            dimension_semantics=("parallel",),             # shard grid on v7x TCs
            vmem_limit_bytes=vmem,
        ),
        cost_estimate=cost,
    )(x_folded, w_mat, b_row)


# ----------------------------------------------------------------------------
# CNNEncoder forward: Conv(Cin->16) ReLU, Conv(16->32) ReLU, Conv(32->64)
# ----------------------------------------------------------------------------
def _fold_weight(weight):
    # OIHW -> (kh, kw, cin, cout) -> (9*cin, cout): matches the cols channel order.
    cout = weight.shape[0]
    return jnp.transpose(weight, (2, 3, 1, 0)).reshape(-1, cout).astype(jnp.bfloat16)


def cnn_encoder_forward(x_nchw, params):
    (w1, b1), (w2, b2), (w3, b3) = params
    n, cin, h, w = x_nchw.shape
    if h % 8 != 0 or w % 8 != 0:
        # TODO(synk): support H/W not divisible by 8 (ragged halos at each level).
        raise ValueError(f"H and W must be multiples of 8, got {(h, w)}")
    ho1, wo1 = h // 2, w // 2
    ho2, wo2 = ho1 // 2, wo1 // 2
    ho3, wo3 = ho2 // 2, wo2 // 2

    # Single NCHW -> NHWC(bf16) pass at the encoder boundary; the width-fold is
    # a free reshape of the contiguous NHWC buffer.
    x_f = jnp.transpose(x_nchw, (0, 2, 3, 1)).astype(jnp.bfloat16)
    x_f = x_f.reshape(n, h, w // 2, 2 * cin)

    y1 = _conv3x3_s2_p1(x_f, _fold_weight(w1),
                        b1.reshape(1, -1).astype(jnp.float32),
                        c=cin, ho=ho1, wo=wo1, relu=True, out_dtype=jnp.bfloat16)
    y1 = y1.reshape(n, ho1, wo1 // 2, 2 * 16)   # next layer's folded input: free

    y2 = _conv3x3_s2_p1(y1, _fold_weight(w2),
                        b2.reshape(1, -1).astype(jnp.float32),
                        c=16, ho=ho2, wo=wo2, relu=True, out_dtype=jnp.bfloat16)
    y2 = y2.reshape(n, ho2, wo2 // 2, 2 * 32)

    y3 = _conv3x3_s2_p1(y2, _fold_weight(w3),
                        b3.reshape(1, -1).astype(jnp.float32),
                        c=32, ho=ho3, wo=wo3, relu=False, out_dtype=jnp.float32)

    # Small transpose back to NCHW at the encoder boundary.
    return jnp.transpose(y3.reshape(n, ho3, wo3, 64), (0, 3, 1, 2))


# ----------------------------------------------------------------------------
# Parameters (PyTorch-style init) and pure-JAX reference (same bf16/f32 recipe)
# ----------------------------------------------------------------------------
def init_params(input_channels, key):
    chans = [(input_channels, 16), (16, 32), (32, 64)]
    params = []
    for i, (cin, cout) in enumerate(chans):
        kw_, kb_ = jax.random.split(jax.random.fold_in(key, i))
        fan_in = cin * 9
        bound = 1.0 / jnp.sqrt(fan_in)
        w = jax.random.uniform(kw_, (cout, cin, 3, 3), jnp.float32, -bound, bound)
        b = jax.random.uniform(kb_, (cout,), jnp.float32, -bound, bound)
        params.append((w, b))
    return params


def _ref_forward(x, params):
    h = x
    n_layers = len(params)
    for idx, (w, b) in enumerate(params):
        y = lax.conv_general_dilated(
            h.astype(jnp.bfloat16), w.astype(jnp.bfloat16),
            window_strides=(2, 2), padding=((1, 1), (1, 1)),
            dimension_numbers=("NCHW", "OIHW", "NCHW"),
            preferred_element_type=jnp.float32,
        ) + b[None, :, None, None]
        if idx < n_layers - 1:
            y = jnp.maximum(y, 0.0).astype(jnp.bfloat16)
        h = y
    return h


if __name__ == "__main__":
    key = jax.random.PRNGKey(0)
    kx, kp = jax.random.split(key)

    N, Cin, H, W = 2, 4, 16, 16
    x = jax.random.normal(kx, (N, Cin, H, W), jnp.float32)
    params = init_params(Cin, kp)

    fwd = jax.jit(cnn_encoder_forward)
    out = jax.block_until_ready(fwd(x, params))

    assert out.shape == (N, 64, H // 8, W // 8), out.shape

    ref = jax.block_until_ready(_ref_forward(x, params))
    max_err = float(jnp.max(jnp.abs(out - ref)))
    assert jnp.allclose(out, ref, atol=1e-2, rtol=1e-2), max_err

    print("KERNEL_OK")
</pallas_src>

<mosaic_0001>
module attributes {stable_mosaic.version = 11 : i64} {
  func.func @_conv_kernel(%arg0: i32, %arg1: memref<1x16x8x8xbf16, #tpu.memory_space<vmem>>, %arg2: memref<36x16xbf16, #tpu.memory_space<vmem>>, %arg3: memref<1x16xf32, #tpu.memory_space<vmem>>, %arg4: memref<1x64x16xbf16, #tpu.memory_space<vmem>>) attributes {dimension_semantics = [#tpu.dimension_semantics<parallel>], iteration_bounds = array<i64: 2>, scalar_prefetch = 0 : i64, scratch_operands = 0 : i64, tpu.core_type = #tpu.core_type<tc>, window_params = [{transform_indices = @transform_0, window_bounds = array<i64: 1, 16, 8, 8>}, {pipeline_mode = #tpu.pipeline_mode<synchronous>, transform_indices = @transform_1, window_bounds = array<i64: 36, 16>}, {pipeline_mode = #tpu.pipeline_mode<synchronous>, transform_indices = @transform_2, window_bounds = array<i64: 1, 16>}, {transform_indices = @transform_3, window_bounds = array<i64: 1, 64, 16>}]} {
    %c0 = arith.constant 0 : index
    %c0_0 = arith.constant 0 : index
    %c0_1 = arith.constant 0 : index
    %c0_2 = arith.constant 0 : index
    %0 = vector.load %arg1[%c0, %c0_0, %c0_1, %c0_2] : memref<1x16x8x8xbf16, #tpu.memory_space<vmem>>, vector<1x16x8x8xbf16>
    %1 = vector.shape_cast %0 : vector<1x16x8x8xbf16> to vector<16x8x8xbf16>
    %2 = arith.extf %1 : vector<16x8x8xbf16> to vector<16x8x8xf32>
    %3 = vector.extract_strided_slice %2 {offsets = [0, 0, 0], sizes = [16, 8, 4], strides = [1, 1, 1]} : vector<16x8x8xf32> to vector<16x8x4xf32>
    %4 = vector.extract_strided_slice %2 {offsets = [0, 0, 4], sizes = [16, 8, 4], strides = [1, 1, 1]} : vector<16x8x8xf32> to vector<16x8x4xf32>
    %cst = arith.constant 0.000000e+00 : f32
    %5 = vector.broadcast %cst : f32 to vector<16x1x4xf32>
    %6 = vector.extract_strided_slice %4 {offsets = [0, 0, 0], sizes = [16, 7, 4], strides = [1, 1, 1]} : vector<16x8x4xf32> to vector<16x7x4xf32>
    %7 = tpu.concatenate %5, %6 in 1 : vector<16x1x4xf32>, vector<16x7x4xf32> -> vector<16x8x4xf32>
    %8 = tpu.concatenate %7, %3, %4 in 2 : vector<16x8x4xf32>, vector<16x8x4xf32>, vector<16x8x4xf32> -> vector<16x8x12xf32>
    %cst_3 = arith.constant 0.000000e+00 : f32
    %9 = vector.broadcast %cst_3 : f32 to vector<1x8x12xf32>
    %10 = tpu.concatenate %9, %8 in 0 : vector<1x8x12xf32>, vector<16x8x12xf32> -> vector<17x8x12xf32>
    %11 = vector.extract_strided_slice %10 {offsets = [0, 0, 0], sizes = [1, 8, 12], strides = [1, 1, 1]} : vector<17x8x12xf32> to vector<1x8x12xf32>
    %12 = vector.shape_cast %11 : vector<1x8x12xf32> to vector<8x12xf32>
    %13 = vector.extract_strided_slice %10 {offsets = [1, 0, 0], sizes = [1, 8, 12], strides = [1, 1, 1]} : vector<17x8x12xf32> to vector<1x8x12xf32>
    %14 = vector.shape_cast %13 : vector<1x8x12xf32> to vector<8x12xf32>
    %15 = vector.extract_strided_slice %10 {offsets = [2, 0, 0], sizes = [1, 8, 12], strides = [1, 1, 1]} : vector<17x8x12xf32> to vector<1x8x12xf32>
    %16 = vector.shape_cast %15 : vector<1x8x12xf32> to vector<8x12xf32>
    %17 = tpu.concatenate %12, %14, %16 in 1 : vector<8x12xf32>, vector<8x12xf32>, vector<8x12xf32> -> vector<8x36xf32>
    %18 = vector.extract_strided_slice %10 {offsets = [2, 0, 0], sizes = [1, 8, 12], strides = [1, 1, 1]} : vector<17x8x12xf32> to vector<1x8x12xf32>
    %19 = vector.shape_cast %18 : vector<1x8x12xf32> to vector<8x12xf32>
    %20 = vector.extract_strided_slice %10 {offsets = [3, 0, 0], sizes = [1, 8, 12], strides = [1, 1, 1]} : vector<17x8x12xf32> to vector<1x8x12xf32>
    %21 = vector.shape_cast %20 : vector<1x8x12xf32> to vector<8x12xf32>
    %22 = vector.extract_strided_slice %10 {offsets = [4, 0, 0], sizes = [1, 8, 12], strides = [1, 1, 1]} : vector<17x8x12xf32> to vector<1x8x12xf32>
    %23 = vector.shape_cast %22 : vector<1x8x12xf32> to vector<8x12xf32>
    %24 = tpu.concatenate %19, %21, %23 in 1 : vector<8x12xf32>, vector<8x12xf32>, vector<8x12xf32> -> vector<8x36xf32>
    %25 = vector.extract_strided_slice %10 {offsets = [4, 0, 0], sizes = [1, 8, 12], strides = [1, 1, 1]} : vector<17x8x12xf32> to vector<1x8x12xf32>
    %26 = vector.shape_cast %25 : vector<1x8x12xf32> to vector<8x12xf32>
    %27 = vector.extract_strided_slice %10 {offsets = [5, 0, 0], sizes = [1, 8, 12], strides = [1, 1, 1]} : vector<17x8x12xf32> to vector<1x8x12xf32>
    %28 = vector.shape_cast %27 : vector<1x8x12xf32> to vector<8x12xf32>
    %29 = vector.extract_strided_slice %10 {offsets = [6, 0, 0], sizes = [1, 8, 12], strides = [1, 1, 1]} : vector<17x8x12xf32> to vector<1x8x12xf32>
    %30 = vector.shape_cast %29 : vector<1x8x12xf32> to vector<8x12xf32>
    %31 = tpu.concatenate %26, %28, %30 in 1 : vector<8x12xf32>, vector<8x12xf32>, vector<8x12xf32> -> vector<8x36xf32>
    %32 = vector.extract_strided_slice %10 {offsets = [6, 0, 0], sizes = [1, 8, 12], strides = [1, 1, 1]} : vector<17x8x12xf32> to vector<1x8x12xf32>
    %33 = vector.shape_cast %32 : vector<1x8x12xf32> to vector<8x12xf32>
    %34 = vector.extract_strided_slice %10 {offsets = [7, 0, 0], sizes = [1, 8, 12], strides = [1, 1, 1]} : vector<17x8x12xf32> to vector<1x8x12xf32>
    %35 = vector.shape_cast %34 : vector<1x8x12xf32> to vector<8x12xf32>
    %36 = vector.extract_strided_slice %10 {offsets = [8, 0, 0], sizes = [1, 8, 12], strides = [1, 1, 1]} : vector<17x8x12xf32> to vector<1x8x12xf32>
    %37 = vector.shape_cast %36 : vector<1x8x12xf32> to vector<8x12xf32>
    %38 = tpu.concatenate %33, %35, %37 in 1 : vector<8x12xf32>, vector<8x12xf32>, vector<8x12xf32> -> vector<8x36xf32>
    %39 = vector.extract_strided_slice %10 {offsets = [8, 0, 0], sizes = [1, 8, 12], strides = [1, 1, 1]} : vector<17x8x12xf32> to vector<1x8x12xf32>
    %40 = vector.shape_cast %39 : vector<1x8x12xf32> to vector<8x12xf32>
    %41 = vector.extract_strided_slice %10 {offsets = [9, 0, 0], sizes = [1, 8, 12], strides = [1, 1, 1]} : vector<17x8x12xf32> to vector<1x8x12xf32>
    %42 = vector.shape_cast %41 : vector<1x8x12xf32> to vector<8x12xf32>
    %43 = vector.extract_strided_slice %10 {offsets = [10, 0, 0], sizes = [1, 8, 12], strides = [1, 1, 1]} : vector<17x8x12xf32> to vector<1x8x12xf32>
    %44 = vector.shape_cast %43 : vector<1x8x12xf32> to vector<8x12xf32>
    %45 = tpu.concatenate %40, %42, %44 in 1 : vector<8x12xf32>, vector<8x12xf32>, vector<8x12xf32> -> vector<8x36xf32>
    %46 = vector.extract_strided_slice %10 {offsets = [10, 0, 0], sizes = [1, 8, 12], strides = [1, 1, 1]} : vector<17x8x12xf32> to vector<1x8x12xf32>
    %47 = vector.shape_cast %46 : vector<1x8x12xf32> to vector<8x12xf32>
    %48 = vector.extract_strided_slice %10 {offsets = [11, 0, 0], sizes = [1, 8, 12], strides = [1, 1, 1]} : vector<17x8x12xf32> to vector<1x8x12xf32>
    %49 = vector.shape_cast %48 : vector<1x8x12xf32> to vector<8x12xf32>
    %50 = vector.extract_strided_slice %10 {offsets = [12, 0, 0], sizes = [1, 8, 12], strides = [1, 1, 1]} : vector<17x8x12xf32> to vector<1x8x12xf32>
    %51 = vector.shape_cast %50 : vector<1x8x12xf32> to vector<8x12xf32>
    %52 = tpu.concatenate %47, %49, %51 in 1 : vector<8x12xf32>, vector<8x12xf32>, vector<8x12xf32> -> vector<8x36xf32>
    %53 = vector.extract_strided_slice %10 {offsets = [12, 0, 0], sizes = [1, 8, 12], strides = [1, 1, 1]} : vector<17x8x12xf32> to vector<1x8x12xf32>
    %54 = vector.shape_cast %53 : vector<1x8x12xf32> to vector<8x12xf32>
    %55 = vector.extract_strided_slice %10 {offsets = [13, 0, 0], sizes = [1, 8, 12], strides = [1, 1, 1]} : vector<17x8x12xf32> to vector<1x8x12xf32>
    %56 = vector.shape_cast %55 : vector<1x8x12xf32> to vector<8x12xf32>
    %57 = vector.extract_strided_slice %10 {offsets = [14, 0, 0], sizes = [1, 8, 12], strides = [1, 1, 1]} : vector<17x8x12xf32> to vector<1x8x12xf32>
    %58 = vector.shape_cast %57 : vector<1x8x12xf32> to vector<8x12xf32>
    %59 = tpu.concatenate %54, %56, %58 in 1 : vector<8x12xf32>, vector<8x12xf32>, vector<8x12xf32> -> vector<8x36xf32>
    %60 = vector.extract_strided_slice %10 {offsets = [14, 0, 0], sizes = [1, 8, 12], strides = [1, 1, 1]} : vector<17x8x12xf32> to vector<1x8x12xf32>
    %61 = vector.shape_cast %60 : vector<1x8x12xf32> to vector<8x12xf32>
    %62 = vector.extract_strided_slice %10 {offsets = [15, 0, 0], sizes = [1, 8, 12], strides = [1, 1, 1]} : vector<17x8x12xf32> to vector<1x8x12xf32>
    %63 = vector.shape_cast %62 : vector<1x8x12xf32> to vector<8x12xf32>
    %64 = vector.extract_strided_slice %10 {offsets = [16, 0, 0], sizes = [1, 8, 12], strides = [1, 1, 1]} : vector<17x8x12xf32> to vector<1x8x12xf32>
    %65 = vector.shape_cast %64 : vector<1x8x12xf32> to vector<8x12xf32>
    %66 = tpu.concatenate %61, %63, %65 in 1 : vector<8x12xf32>, vector<8x12xf32>, vector<8x12xf32> -> vector<8x36xf32>
    %67 = tpu.concatenate %17, %24, %31, %38, %45, %52, %59, %66 in 0 : vector<8x36xf32>, vector<8x36xf32>, vector<8x36xf32>, vector<8x36xf32>, vector<8x36xf32>, vector<8x36xf32>, vector<8x36xf32>, vector<8x36xf32> -> vector<64x36xf32>
    %68 = arith.truncf %67 : vector<64x36xf32> to vector<64x36xbf16>
    %c0_4 = arith.constant 0 : index
    %c0_5 = arith.constant 0 : index
    %69 = vector.load %arg2[%c0_4, %c0_5] : memref<36x16xbf16, #tpu.memory_space<vmem>>, vector<36x16xbf16>
    %cst_6 = arith.constant dense<0.000000e+00> : vector<64x16xf32>
    %70 = tpu.matmul %68, %69, %cst_6 {dimension_numbers = #tpu.dot_dimension_numbers<[1], [0], [0], [1], [0, 0, 1, 1], [], []>} : vector<64x36xbf16>, vector<36x16xbf16>, vector<64x16xf32> -> vector<64x16xf32>
    %c0_7 = arith.constant 0 : index
    %c0_8 = arith.constant 0 : index
    %71 = vector.load %arg3[%c0_7, %c0_8] : memref<1x16xf32, #tpu.memory_space<vmem>>, vector<1x16xf32>
    %72 = vector.broadcast %71 : vector<1x16xf32> to vector<64x16xf32>
    %73 = arith.addf %70, %72 : vector<64x16xf32>
    %cst_9 = arith.constant 0.000000e+00 : f32
    %74 = vector.broadcast %cst_9 : f32 to vector<64x16xf32>
    %75 = arith.maximumf %73, %74 : vector<64x16xf32>
    %76 = arith.truncf %75 : vector<64x16xf32> to vector<64x16xbf16>
    %c0_10 = arith.constant 0 : index
    %c0_11 = arith.constant 0 : index
    %c0_12 = arith.constant 0 : index
    %77 = vector.load %arg4[%c0_10, %c0_11, %c0_12] : memref<1x64x16xbf16, #tpu.memory_space<vmem>>, vector<1x64x16xbf16>
    %78 = vector.shape_cast %77 : vector<1x64x16xbf16> to vector<64x16xbf16>
    %79 = vector.shape_cast %76 : vector<64x16xbf16> to vector<1x64x16xbf16>
    tpu.vector_store %arg4[%c0_10, %c0_11, %c0_12], %79 {strides = array<i32>} : memref<1x64x16xbf16, #tpu.memory_space<vmem>>, vector<1x64x16xbf16>,
    return
  }
  func.func @transform_0(%arg0: i32) -> (i32, i32, i32, i32) {
    %c0_i32 = arith.constant 0 : i32
    %c0_i32_0 = arith.constant 0 : i32
    %c0_i32_1 = arith.constant 0 : i32
    %c0_i32_2 = arith.constant 0 : i32
    return %arg0, %c0_i32, %c0_i32_0, %c0_i32_1 : i32, i32, i32, i32
  }
  func.func @transform_1(%arg0: i32) -> (i32, i32) {
    %c0_i32 = arith.constant 0 : i32
    %c0_i32_0 = arith.constant 0 : i32
    %c0_i32_1 = arith.constant 0 : i32
    return %c0_i32, %c0_i32_0 : i32, i32
  }
  func.func @transform_2(%arg0: i32) -> (i32, i32) {
    %c0_i32 = arith.constant 0 : i32
    %c0_i32_0 = arith.constant 0 : i32
    %c0_i32_1 = arith.constant 0 : i32
    return %c0_i32, %c0_i32_0 : i32, i32
  }
  func.func @transform_3(%arg0: i32) -> (i32, i32, i32) {
    %c0_i32 = arith.constant 0 : i32
    %c0_i32_0 = arith.constant 0 : i32
    %c0_i32_1 = arith.constant 0 : i32
    return %arg0, %c0_i32, %c0_i32_0 : i32, i32, i32
  }
}

module attributes {stable_mosaic.version = 11 : i64} {
  func.func @_conv_kernel(%arg0: i32, %arg1: memref<1x8x4x32xbf16, #tpu.memory_space<vmem>>, %arg2: memref<144x32xbf16, #tpu.memory_space<vmem>>, %arg3: memref<1x32xf32, #tpu.memory_space<vmem>>, %arg4: memref<1x16x32xbf16, #tpu.memory_space<vmem>>) attributes {dimension_semantics = [#tpu.dimension_semantics<parallel>], iteration_bounds = array<i64: 2>, scalar_prefetch = 0 : i64, scratch_operands = 0 : i64, tpu.core_type = #tpu.core_type<tc>, window_params = [{transform_indices = @transform_0, window_bounds = array<i64: 1, 8, 4, 32>}, {pipeline_mode = #tpu.pipeline_mode<synchronous>, transform_indices = @transform_1, window_bounds = array<i64: 144, 32>}, {pipeline_mode = #tpu.pipeline_mode<synchronous>, transform_indices = @transform_2, window_bounds = array<i64: 1, 32>}, {transform_indices = @transform_3, window_bounds = array<i64: 1, 16, 32>}]} {
    %c0 = arith.constant 0 : index
    %c0_0 = arith.constant 0 : index
    %c0_1 = arith.constant 0 : index
    %c0_2 = arith.constant 0 : index
    %0 = vector.load %arg1[%c0, %c0_0, %c0_1, %c0_2] : memref<1x8x4x32xbf16, #tpu.memory_space<vmem>>, vector<1x8x4x32xbf16>
    %1 = vector.shape_cast %0 : vector<1x8x4x32xbf16> to vector<8x4x32xbf16>
    %2 = arith.extf %1 : vector<8x4x32xbf16> to vector<8x4x32xf32>
    %3 = vector.extract_strided_slice %2 {offsets = [0, 0, 0], sizes = [8, 4, 16], strides = [1, 1, 1]} : vector<8x4x32xf32> to vector<8x4x16xf32>
    %4 = vector.extract_strided_slice %2 {offsets = [0, 0, 16], sizes = [8, 4, 16], strides = [1, 1, 1]} : vector<8x4x32xf32> to vector<8x4x16xf32>
    %cst = arith.constant 0.000000e+00 : f32
    %5 = vector.broadcast %cst : f32 to vector<8x1x16xf32>
    %6 = vector.extract_strided_slice %4 {offsets = [0, 0, 0], sizes = [8, 3, 16], strides = [1, 1, 1]} : vector<8x4x16xf32> to vector<8x3x16xf32>
    %7 = tpu.concatenate %5, %6 in 1 : vector<8x1x16xf32>, vector<8x3x16xf32> -> vector<8x4x16xf32>
    %8 = tpu.concatenate %7, %3, %4 in 2 : vector<8x4x16xf32>, vector<8x4x16xf32>, vector<8x4x16xf32> -> vector<8x4x48xf32>
    %cst_3 = arith.constant 0.000000e+00 : f32
    %9 = vector.broadcast %cst_3 : f32 to vector<1x4x48xf32>
    %10 = tpu.concatenate %9, %8 in 0 : vector<1x4x48xf32>, vector<8x4x48xf32> -> vector<9x4x48xf32>
    %11 = vector.extract_strided_slice %10 {offsets = [0, 0, 0], sizes = [1, 4, 48], strides = [1, 1, 1]} : vector<9x4x48xf32> to vector<1x4x48xf32>
    %12 = vector.shape_cast %11 : vector<1x4x48xf32> to vector<4x48xf32>
    %13 = vector.extract_strided_slice %10 {offsets = [1, 0, 0], sizes = [1, 4, 48], strides = [1, 1, 1]} : vector<9x4x48xf32> to vector<1x4x48xf32>
    %14 = vector.shape_cast %13 : vector<1x4x48xf32> to vector<4x48xf32>
    %15 = vector.extract_strided_slice %10 {offsets = [2, 0, 0], sizes = [1, 4, 48], strides = [1, 1, 1]} : vector<9x4x48xf32> to vector<1x4x48xf32>
    %16 = vector.shape_cast %15 : vector<1x4x48xf32> to vector<4x48xf32>
    %17 = tpu.concatenate %12, %14, %16 in 1 : vector<4x48xf32>, vector<4x48xf32>, vector<4x48xf32> -> vector<4x144xf32>
    %18 = vector.extract_strided_slice %10 {offsets = [2, 0, 0], sizes = [1, 4, 48], strides = [1, 1, 1]} : vector<9x4x48xf32> to vector<1x4x48xf32>
    %19 = vector.shape_cast %18 : vector<1x4x48xf32> to vector<4x48xf32>
    %20 = vector.extract_strided_slice %10 {offsets = [3, 0, 0], sizes = [1, 4, 48], strides = [1, 1, 1]} : vector<9x4x48xf32> to vector<1x4x48xf32>
    %21 = vector.shape_cast %20 : vector<1x4x48xf32> to vector<4x48xf32>
    %22 = vector.extract_strided_slice %10 {offsets = [4, 0, 0], sizes = [1, 4, 48], strides = [1, 1, 1]} : vector<9x4x48xf32> to vector<1x4x48xf32>
    %23 = vector.shape_cast %22 : vector<1x4x48xf32> to vector<4x48xf32>
    %24 = tpu.concatenate %19, %21, %23 in 1 : vector<4x48xf32>, vector<4x48xf32>, vector<4x48xf32> -> vector<4x144xf32>
    %25 = vector.extract_strided_slice %10 {offsets = [4, 0, 0], sizes = [1, 4, 48], strides = [1, 1, 1]} : vector<9x4x48xf32> to vector<1x4x48xf32>
    %26 = vector.shape_cast %25 : vector<1x4x48xf32> to vector<4x48xf32>
    %27 = vector.extract_strided_slice %10 {offsets = [5, 0, 0], sizes = [1, 4, 48], strides = [1, 1, 1]} : vector<9x4x48xf32> to vector<1x4x48xf32>
    %28 = vector.shape_cast %27 : vector<1x4x48xf32> to vector<4x48xf32>
    %29 = vector.extract_strided_slice %10 {offsets = [6, 0, 0], sizes = [1, 4, 48], strides = [1, 1, 1]} : vector<9x4x48xf32> to vector<1x4x48xf32>
    %30 = vector.shape_cast %29 : vector<1x4x48xf32> to vector<4x48xf32>
    %31 = tpu.concatenate %26, %28, %30 in 1 : vector<4x48xf32>, vector<4x48xf32>, vector<4x48xf32> -> vector<4x144xf32>
    %32 = vector.extract_strided_slice %10 {offsets = [6, 0, 0], sizes = [1, 4, 48], strides = [1, 1, 1]} : vector<9x4x48xf32> to vector<1x4x48xf32>
    %33 = vector.shape_cast %32 : vector<1x4x48xf32> to vector<4x48xf32>
    %34 = vector.extract_strided_slice %10 {offsets = [7, 0, 0], sizes = [1, 4, 48], strides = [1, 1, 1]} : vector<9x4x48xf32> to vector<1x4x48xf32>
    %35 = vector.shape_cast %34 : vector<1x4x48xf32> to vector<4x48xf32>
    %36 = vector.extract_strided_slice %10 {offsets = [8, 0, 0], sizes = [1, 4, 48], strides = [1, 1, 1]} : vector<9x4x48xf32> to vector<1x4x48xf32>
    %37 = vector.shape_cast %36 : vector<1x4x48xf32> to vector<4x48xf32>
    %38 = tpu.concatenate %33, %35, %37 in 1 : vector<4x48xf32>, vector<4x48xf32>, vector<4x48xf32> -> vector<4x144xf32>
    %39 = tpu.concatenate %17, %24, %31, %38 in 0 : vector<4x144xf32>, vector<4x144xf32>, vector<4x144xf32>, vector<4x144xf32> -> vector<16x144xf32>
    %40 = arith.truncf %39 : vector<16x144xf32> to vector<16x144xbf16>
    %c0_4 = arith.constant 0 : index
    %c0_5 = arith.constant 0 : index
    %41 = vector.load %arg2[%c0_4, %c0_5] : memref<144x32xbf16, #tpu.memory_space<vmem>>, vector<144x32xbf16>
    %cst_6 = arith.constant dense<0.000000e+00> : vector<16x32xf32>
    %42 = tpu.matmul %40, %41, %cst_6 {dimension_numbers = #tpu.dot_dimension_numbers<[1], [0], [0], [1], [0, 0, 1, 1], [], []>} : vector<16x144xbf16>, vector<144x32xbf16>, vector<16x32xf32> -> vector<16x32xf32>
    %c0_7 = arith.constant 0 : index
    %c0_8 = arith.constant 0 : index
    %43 = vector.load %arg3[%c0_7, %c0_8] : memref<1x32xf32, #tpu.memory_space<vmem>>, vector<1x32xf32>
    %44 = vector.broadcast %43 : vector<1x32xf32> to vector<16x32xf32>
    %45 = arith.addf %42, %44 : vector<16x32xf32>
    %cst_9 = arith.constant 0.000000e+00 : f32
    %46 = vector.broadcast %cst_9 : f32 to vector<16x32xf32>
    %47 = arith.maximumf %45, %46 : vector<16x32xf32>
    %48 = arith.truncf %47 : vector<16x32xf32> to vector<16x32xbf16>
    %c0_10 = arith.constant 0 : index
    %c0_11 = arith.constant 0 : index
    %c0_12 = arith.constant 0 : index
    %49 = vector.load %arg4[%c0_10, %c0_11, %c0_12] : memref<1x16x32xbf16, #tpu.memory_space<vmem>>, vector<1x16x32xbf16>
    %50 = vector.shape_cast %49 : vector<1x16x32xbf16> to vector<16x32xbf16>
    %51 = vector.shape_cast %48 : vector<16x32xbf16> to vector<1x16x32xbf16>
    tpu.vector_store %arg4[%c0_10, %c0_11, %c0_12], %51 {strides = array<i32>} : memref<1x16x32xbf16, #tpu.memory_space<vmem>>, vector<1x16x32xbf16>,
    return
  }
  func.func @transform_0(%arg0: i32) -> (i32, i32, i32, i32) {
    %c0_i32 = arith.constant 0 : i32
    %c0_i32_0 = arith.constant 0 : i32
    %c0_i32_1 = arith.constant 0 : i32
    %c0_i32_2 = arith.constant 0 : i32
    return %arg0, %c0_i32, %c0_i32_0, %c0_i32_1 : i32, i32, i32, i32
  }
  func.func @transform_1(%arg0: i32) -> (i32, i32) {
    %c0_i32 = arith.constant 0 : i32
    %c0_i32_0 = arith.constant 0 : i32
    %c0_i32_1 = arith.constant 0 : i32
    return %c0_i32, %c0_i32_0 : i32, i32
  }
  func.func @transform_2(%arg0: i32) -> (i32, i32) {
    %c0_i32 = arith.constant 0 : i32
    %c0_i32_0 = arith.constant 0 : i32
    %c0_i32_1 = arith.constant 0 : i32
    return %c0_i32, %c0_i32_0 : i32, i32
  }
  func.func @transform_3(%arg0: i32) -> (i32, i32, i32) {
    %c0_i32 = arith.constant 0 : i32
    %c0_i32_0 = arith.constant 0 : i32
    %c0_i32_1 = arith.constant 0 : i32
    return %arg0, %c0_i32, %c0_i32_0 : i32, i32, i32
  }
}

module attributes {stable_mosaic.version = 11 : i64} {
  func.func @_conv_kernel(%arg0: i32, %arg1: memref<1x4x2x64xbf16, #tpu.memory_space<vmem>>, %arg2: memref<288x64xbf16, #tpu.memory_space<vmem>>, %arg3: memref<1x64xf32, #tpu.memory_space<vmem>>, %arg4: memref<1x4x64xf32, #tpu.memory_space<vmem>>) attributes {dimension_semantics = [#tpu.dimension_semantics<parallel>], iteration_bounds = array<i64: 2>, scalar_prefetch = 0 : i64, scratch_operands = 0 : i64, tpu.core_type = #tpu.core_type<tc>, window_params = [{transform_indices = @transform_0, window_bounds = array<i64: 1, 4, 2, 64>}, {pipeline_mode = #tpu.pipeline_mode<synchronous>, transform_indices = @transform_1, window_bounds = array<i64: 288, 64>}, {pipeline_mode = #tpu.pipeline_mode<synchronous>, transform_indices = @transform_2, window_bounds = array<i64: 1, 64>}, {transform_indices = @transform_3, window_bounds = array<i64: 1, 4, 64>}]} {
    %c0 = arith.constant 0 : index
    %c0_0 = arith.constant 0 : index
    %c0_1 = arith.constant 0 : index
    %c0_2 = arith.constant 0 : index
    %0 = vector.load %arg1[%c0, %c0_0, %c0_1, %c0_2] : memref<1x4x2x64xbf16, #tpu.memory_space<vmem>>, vector<1x4x2x64xbf16>
    %1 = vector.shape_cast %0 : vector<1x4x2x64xbf16> to vector<4x2x64xbf16>
    %2 = arith.extf %1 : vector<4x2x64xbf16> to vector<4x2x64xf32>
    %3 = vector.extract_strided_slice %2 {offsets = [0, 0, 0], sizes = [4, 2, 32], strides = [1, 1, 1]} : vector<4x2x64xf32> to vector<4x2x32xf32>
    %4 = vector.extract_strided_slice %2 {offsets = [0, 0, 32], sizes = [4, 2, 32], strides = [1, 1, 1]} : vector<4x2x64xf32> to vector<4x2x32xf32>
    %cst = arith.constant 0.000000e+00 : f32
    %5 = vector.broadcast %cst : f32 to vector<4x1x32xf32>
    %6 = vector.extract_strided_slice %4 {offsets = [0, 0, 0], sizes = [4, 1, 32], strides = [1, 1, 1]} : vector<4x2x32xf32> to vector<4x1x32xf32>
    %7 = tpu.concatenate %5, %6 in 1 : vector<4x1x32xf32>, vector<4x1x32xf32> -> vector<4x2x32xf32>
    %8 = tpu.concatenate %7, %3, %4 in 2 : vector<4x2x32xf32>, vector<4x2x32xf32>, vector<4x2x32xf32> -> vector<4x2x96xf32>
    %cst_3 = arith.constant 0.000000e+00 : f32
    %9 = vector.broadcast %cst_3 : f32 to vector<1x2x96xf32>
    %10 = tpu.concatenate %9, %8 in 0 : vector<1x2x96xf32>, vector<4x2x96xf32> -> vector<5x2x96xf32>
    %11 = vector.extract_strided_slice %10 {offsets = [0, 0, 0], sizes = [1, 2, 96], strides = [1, 1, 1]} : vector<5x2x96xf32> to vector<1x2x96xf32>
    %12 = vector.shape_cast %11 : vector<1x2x96xf32> to vector<2x96xf32>
    %13 = vector.extract_strided_slice %10 {offsets = [1, 0, 0], sizes = [1, 2, 96], strides = [1, 1, 1]} : vector<5x2x96xf32> to vector<1x2x96xf32>
    %14 = vector.shape_cast %13 : vector<1x2x96xf32> to vector<2x96xf32>
    %15 = vector.extract_strided_slice %10 {offsets = [2, 0, 0], sizes = [1, 2, 96], strides = [1, 1, 1]} : vector<5x2x96xf32> to vector<1x2x96xf32>
    %16 = vector.shape_cast %15 : vector<1x2x96xf32> to vector<2x96xf32>
    %17 = tpu.concatenate %12, %14, %16 in 1 : vector<2x96xf32>, vector<2x96xf32>, vector<2x96xf32> -> vector<2x288xf32>
    %18 = vector.extract_strided_slice %10 {offsets = [2, 0, 0], sizes = [1, 2, 96], strides = [1, 1, 1]} : vector<5x2x96xf32> to vector<1x2x96xf32>
    %19 = vector.shape_cast %18 : vector<1x2x96xf32> to vector<2x96xf32>
    %20 = vector.extract_strided_slice %10 {offsets = [3, 0, 0], sizes = [1, 2, 96], strides = [1, 1, 1]} : vector<5x2x96xf32> to vector<1x2x96xf32>
    %21 = vector.shape_cast %20 : vector<1x2x96xf32> to vector<2x96xf32>
    %22 = vector.extract_strided_slice %10 {offsets = [4, 0, 0], sizes = [1, 2, 96], strides = [1, 1, 1]} : vector<5x2x96xf32> to vector<1x2x96xf32>
    %23 = vector.shape_cast %22 : vector<1x2x96xf32> to vector<2x96xf32>
    %24 = tpu.concatenate %19, %21, %23 in 1 : vector<2x96xf32>, vector<2x96xf32>, vector<2x96xf32> -> vector<2x288xf32>
    %25 = tpu.concatenate %17, %24 in 0 : vector<2x288xf32>, vector<2x288xf32> -> vector<4x288xf32>
    %26 = arith.truncf %25 : vector<4x288xf32> to vector<4x288xbf16>
    %c0_4 = arith.constant 0 : index
    %c0_5 = arith.constant 0 : index
    %27 = vector.load %arg2[%c0_4, %c0_5] : memref<288x64xbf16, #tpu.memory_space<vmem>>, vector<288x64xbf16>
    %cst_6 = arith.constant dense<0.000000e+00> : vector<4x64xf32>
    %28 = tpu.matmul %26, %27, %cst_6 {dimension_numbers = #tpu.dot_dimension_numbers<[1], [0], [0], [1], [0, 0, 1, 1], [], []>} : vector<4x288xbf16>, vector<288x64xbf16>, vector<4x64xf32> -> vector<4x64xf32>
    %c0_7 = arith.constant 0 : index
    %c0_8 = arith.constant 0 : index
    %29 = vector.load %arg3[%c0_7, %c0_8] : memref<1x64xf32, #tpu.memory_space<vmem>>, vector<1x64xf32>
    %30 = vector.broadcast %29 : vector<1x64xf32> to vector<4x64xf32>
    %31 = arith.addf %28, %30 : vector<4x64xf32>
    %c0_9 = arith.constant 0 : index
    %c0_10 = arith.constant 0 : index
    %c0_11 = arith.constant 0 : index
    %32 = vector.load %arg4[%c0_9, %c0_10, %c0_11] : memref<1x4x64xf32, #tpu.memory_space<vmem>>, vector<1x4x64xf32>
    %33 = vector.shape_cast %32 : vector<1x4x64xf32> to vector<4x64xf32>
    %34 = vector.shape_cast %31 : vector<4x64xf32> to vector<1x4x64xf32>
    tpu.vector_store %arg4[%c0_9, %c0_10, %c0_11], %34 {strides = array<i32>} : memref<1x4x64xf32, #tpu.memory_space<vmem>>, vector<1x4x64xf32>,
    return
  }
  func.func @transform_0(%arg0: i32) -> (i32, i32, i32, i32) {
    %c0_i32 = arith.constant 0 : i32
    %c0_i32_0 = arith.constant 0 : i32
    %c0_i32_1 = arith.constant 0 : i32
    %c0_i32_2 = arith.constant 0 : i32
    return %arg0, %c0_i32, %c0_i32_0, %c0_i32_1 : i32, i32, i32, i32
  }
  func.func @transform_1(%arg0: i32) -> (i32, i32) {
    %c0_i32 = arith.constant 0 : i32
    %c0_i32_0 = arith.constant 0 : i32
    %c0_i32_1 = arith.constant 0 : i32
    return %c0_i32, %c0_i32_0 : i32, i32
  }
  func.func @transform_2(%arg0: i32) -> (i32, i32) {
    %c0_i32 = arith.constant 0 : i32
    %c0_i32_0 = arith.constant 0 : i32
    %c0_i32_1 = arith.constant 0 : i32
    return %c0_i32, %c0_i32_0 : i32, i32
  }
  func.func @transform_3(%arg0: i32) -> (i32, i32, i32) {
    %c0_i32 = arith.constant 0 : i32
    %c0_i32_0 = arith.constant 0 : i32
    %c0_i32_1 = arith.constant 0 : i32
    return %arg0, %c0_i32, %c0_i32_0 : i32, i32, i32
  }
}

</mosaic_0001>

<bundles_post_ra>
// kernel: cnn_encoder_forward.3
= control target key start
LH: loop header
LB: loop body
LE: loop exit
PB: predicated region body
PF: predicated region fallthrough
CT: control target
= control target key end

     0   :  { %s859_s12 = smov 0   ;;  %s1044_s0 = inlined_call_operand.vmem [shape: bf16[2,16,8,8], index: 0, kind: input, shape index: {}]   ;;  %s1045_s1 = inlined_call_operand.vmem [shape: bf16[36,16], index: 1, kind: input, shape index: {}]   ;;  %s1046_s2 = inlined_call_operand.vmem [shape: f32[1,16], index: 2, kind: input, shape index: {}]   ;;  %s1047_s3 = inlined_call_operand.vmem [shape: bf16[2,64,16], index: 3, kind: output, shape index: {}]  }
   0x1 LB: > { %s619_s13 = sadd.s32 4294967295, %s833_s12   ;;  %p623_p0 = scmp.ge.s32.totalorder %s833_s12, 1  ;;  %s833_s12 = sphi %s859_s12, %s13_s12  }
   0x2   : > { %p137_p1 = scmp.lt.s32.totalorder %s833_s12, 3 }
   0x4   : > { %p138_p2 = pnand %p623_p0, %p137_p1 }
   0x5   : > { %p161_p3 = scmp.lt.s32.totalorder (!%p138_p2), %s619_s13, 1  ;;  %s835_s18 = smov (!%p138_p2), 124  }
   0x6   : > { %141 = sbr.rel (%p138_p2) target bundleno = 436 (0x1b4), region = 32  ;;  %s836_s19 = smov (!%p138_p2), 4  }
   0x7   : > { %s837_s20 = smov (!%p138_p2), 12   ;;  %s838_s21 = smov (!%p138_p2), 24  }
   0xb   : > { %s1049_s13 = smov (!%p161_p3, %s619_s13), 1  ;;  %vm284_vm0 = vcmask 1040384   ;;  %vm349_vm1 = vcmask 31744   ;;  %vm366_vm2 = vcmask 64512   ;;  %vm506_vm3 = vcmask 1041408  }
   0xc   : > { %s642_s14 = sshll.u32 %s1049_s13, 6  ;;  %vm391_vm4 = vcmask 97280   ;;  %vm393_vm5 = vcmask 195584   ;;  %vm493_vm6 = vcmask 293888   ;;  %s643_s30 = sshll.u32 %s1049_s13, 5  ;;  %vm555_vm7 = vcmask 125952  }
   0xd   : > { %s873_s17 = scalar_lea.vmem %s1044_s0, %s642_s14  ;;  %s1023_s6 = scalar_lea.vmem %s1047_s3, %s643_s30 }
   0xe   : > { %v681_v0 = vld [vmem:[%s873_s17 + $0x20] sm:$0xff]   ;;  %v682_v1 = vld [vmem:[%s873_s17 + $0x28] sm:$0xff]   ;;  %v683_v2 = vld [vmem:[%s873_s17 + $0x30] sm:$0xff]  }
   0xf   : > { %v665_v3 = vunpack.c.h.bf16 %v681_v0  ;;  %v669_v4 = vunpack.c.h.bf16 %v682_v1  ;;  %v664_v5 = vunpack.c.l.bf16 %v681_v0  ;;  %v668_v6 = vunpack.c.l.bf16 %v682_v1  ;;  %v684_v7 = vld [vmem:[%s873_s17 + $0x38] sm:$0xff]   ;;  %v647_v25 = vld [vmem:[%s873_s17] sm:$0xff]   ;;  %v678_v26 = vld [vmem:[%s873_s17 + $0x8] sm:$0xff]  }
  0x10   : > { %v673_v8 = vunpack.c.h.bf16 %v683_v2  ;;  %v677_v9 = vunpack.c.h.bf16 %v684_v7  ;;  %v672_v10 = vunpack.c.l.bf16 %v683_v2  ;;  %v676_v11 = vunpack.c.l.bf16 %v684_v7  ;;  %v679_v30 = vld [vmem:[%s873_s17 + $0x10] sm:$0xff]   ;;  %v680_v31 = vld [vmem:[%s873_s17 + $0x18] sm:$0xff]  }
  0x11   : > { %v229_v12 = vrot.slane %v665_v3, 7  ;;  %v231_v13 = vrot.slane %v669_v4, 7  ;;  %v228_v14 = vrot.slane %v664_v5, 7  ;;  %v230_v15 = vrot.slane %v668_v6, 7 }
  0x12   : > { %v706_v18 = vpack.i.bf16 %v668_v6, %v664_v5  ;;  %v233_v19 = vrot.slane %v673_v8, 7  ;;  %v235_v20 = vrot.slane %v677_v9, 7  ;;  %v232_v21 = vrot.slane %v672_v10, 7 }
  0x13   : > { %v731_v16 = vpack.i.bf16 %v231_v13, %v229_v12  ;;  %v716_v17 = vpack.i.bf16 %v230_v15, %v228_v14  ;;  %v234_v22 = vrot.slane %v676_v11, 7  ;;  %v711_v27 = vpack.i.bf16 %v676_v11, %v672_v10 }
  0x14   : > { %707 = vrot.lane.b32.xlu2 %v706_v18, %s836_s19  ;;  %v736_v23 = vpack.i.bf16 %v235_v20, %v233_v19  ;;  %v648_v28 = vunpack.c.l.bf16 %v647_v25  ;;  %v652_v29 = vunpack.c.l.bf16 %v678_v26  ;;  %v741_v34 = vpack.i.bf16 %v677_v9, %v673_v8 }
  0x15   : > { %732 = vrot.lane.b32.xlu1 %v731_v16, %s835_s18  ;;  %717 = vrot.lane.b32.xlu0 %v716_v17, %s835_s18  ;;  %v721_v24 = vpack.i.bf16 %v234_v22, %v232_v21  ;;  %v726_v35 = vpack.i.bf16 %v669_v4, %v665_v3  ;;  %v656_v36 = vunpack.c.l.bf16 %v679_v30  ;;  %v660_v37 = vunpack.c.l.bf16 %v680_v31 }
  0x16   : > { %v220_v32 = vrot.slane %v648_v28, 7  ;;  %v222_v33 = vrot.slane %v652_v29, 7  ;;  %v649_v38 = vunpack.c.h.bf16 %v647_v25  ;;  %v653_v39 = vunpack.c.h.bf16 %v678_v26 }
  0x17   : > { %v657_v41 = vunpack.c.h.bf16 %v679_v30  ;;  %v661_v42 = vunpack.c.h.bf16 %v680_v31  ;;  %v224_v43 = vrot.slane %v656_v36, 7  ;;  %v226_v44 = vrot.slane %v660_v37, 7 }
  0x18   : > { %v746_v40 = vpack.i.bf16 %v222_v33, %v220_v32  ;;  %v221_v45 = vrot.slane %v649_v38, 7  ;;  %v223_v46 = vrot.slane %v653_v39, 7  ;;  %v771_v52 = vpack.i.bf16 %v660_v37, %v656_v36 }
  0x19   : > { %v225_v47 = vrot.slane %v657_v41, 7  ;;  %v227_v48 = vrot.slane %v661_v42, 7  ;;  %v751_v49 = vpack.i.bf16 %v226_v44, %v224_v43  ;;  %v766_v53 = vpack.i.bf16 %v652_v29, %v648_v28 }
  0x1a   : > { %v756_v50 = vpack.i.bf16 %v223_v46, %v221_v45  ;;  %v776_v54 = vpack.i.bf16 %v653_v39, %v649_v38  ;;  %v781_v55 = vpack.i.bf16 %v661_v42, %v657_v41 }
  0x1b   : > { %v761_v51 = vpack.i.bf16 %v227_v48, %v225_v47 }
  0x1c   : > { %712 = vrot.lane.b32.xlu2 %v711_v27, %s836_s19 }
  0x1d   : > { %737 = vrot.lane.b32.xlu1 %v736_v23, %s835_s18  ;;  %722 = vrot.lane.b32.xlu0 %v721_v24, %s835_s18 }
  0x24   : > { %747 = vrot.lane.b32.xlu2 %v746_v40, %s835_s18 }
  0x25   : > { %742 = vrot.lane.b32.xlu1 %v741_v34, %s836_s19  ;;  %727 = vrot.lane.b32.xlu0 %v726_v35, %s836_s19 }
  0x2c   : > { %762 = vrot.lane.b32.xlu2 %v761_v51, %s835_s18 }
  0x2d   : > { %752 = vrot.lane.b32.xlu0 %v751_v49, %s835_s18  ;;  %757 = vrot.lane.b32.xlu1 %v756_v50, %s835_s18 }
  0x34   : > { %777 = vrot.lane.b32.xlu2 %v776_v54, %s836_s19 }
  0x35   : > { %772 = vrot.lane.b32.xlu1 %v771_v52, %s836_s19  ;;  %767 = vrot.lane.b32.xlu0 %v766_v53, %s836_s19 }
  0x3d   : > { %782 = vrot.lane.b32.xlu0 %v781_v55, %s836_s19 }
  0x6e   : > { %v708_v56 = vpop.permute.xlu2 %707 }
  0x6f   : > { %v710_v58 = vunpack.i.h.bf16 %v708_v56  ;;  %v709_v59 = vunpack.i.l.bf16 %v708_v56 }
  0x76   : > { %v713_v57 = vpop.permute.xlu2 %712 }
  0x77   : > { %v715_v8 = vunpack.i.h.bf16 %v713_v57  ;;  %v714_v9 = vunpack.i.l.bf16 %v713_v57 }
  0x7e   : > { %v899_v0 = vpop.permute.xlu2 %747 }
  0x86   : > { %v910_v16 = vpop.permute.xlu2 %762 }
  0x87   : > { %v733_v60 = vpop.permute.xlu1 %732  ;;  %v718_v61 = vpop.permute.xlu0 %717 }
  0x88   : > { %v720_v62 = vunpack.i.h.bf16 %v718_v61  ;;  %v719_v63 = vunpack.i.l.bf16 %v718_v61  ;;  %v735_v19 = vunpack.i.h.bf16 %v733_v60  ;;  %v734_v22 = vunpack.i.l.bf16 %v733_v60 }
  0x89   : > { %v750_v61 = vunpack.i.h.bf16 %v899_v0 }
  0x8a   : > { %v295_v1 = vsel %vm284_vm0, 0.0, %v720_v62  ;;  %v293_v2 = vsel %vm284_vm0, 0.0, %v719_v63  ;;  %v296_v32 = vsel %vm284_vm0, 0.0, %v735_v19  ;;  %v294_v33 = vsel %vm284_vm0, 0.0, %v734_v22 }
  0x8b   : > { %v360_v3 = vsel %vm349_vm1, %v295_v1, %v710_v58  ;;  %v358_v4 = vsel %vm349_vm1, %v293_v2, %v709_v59  ;;  %v749_v62 = vunpack.i.l.bf16 %v899_v0  ;;  %v764_v22 = vunpack.i.l.bf16 %v910_v16 }
  0x8c   : > { %v375_v5 = vsel %vm366_vm2, %v358_v4, %v709_v59  ;;  %v377_v6 = vsel %vm366_vm2, %v360_v3, %v710_v58 }
  0x8d   : > { %v786_v7 = vpack.i.bf16 %v377_v6, %v375_v5 }
  0x8e   : > { %v778_v46 = vpop.permute.xlu2 %777 }
  0x8f   : > { %v738_v10 = vpop.permute.xlu1 %737  ;;  %v723_v11 = vpop.permute.xlu0 %722  ;;  %787 = vrot.lane.b32.xlu1 %v786_v7, %s837_s20  ;;  %v780_v49 = vunpack.i.h.bf16 %v778_v46  ;;  %v779_v50 = vunpack.i.l.bf16 %v778_v46 }
  0x90   : > { %v725_v12 = vunpack.i.h.bf16 %v723_v11  ;;  %v724_v13 = vunpack.i.l.bf16 %v723_v11  ;;  %v740_v23 = vunpack.i.h.bf16 %v738_v10  ;;  %v739_v24 = vunpack.i.l.bf16 %v738_v10 }
  0x91   : > { %v285_v10 = vsel %vm284_vm0, 0.0, %v749_v62 }
  0x92   : > { %v299_v14 = vsel %vm284_vm0, 0.0, %v725_v12  ;;  %v297_v15 = vsel %vm284_vm0, 0.0, %v724_v13  ;;  %v300_v34 = vsel %vm284_vm0, 0.0, %v740_v23  ;;  %v298_v35 = vsel %vm284_vm0, 0.0, %v739_v24 }
  0x93   : > { %v364_v17 = vsel %vm349_vm1, %v299_v14, %v715_v8  ;;  %v362_v18 = vsel %vm349_vm1, %v297_v15, %v714_v9 }
  0x94   : > { %v379_v20 = vsel %vm366_vm2, %v362_v18, %v714_v9  ;;  %v381_v21 = vsel %vm366_vm2, %v364_v17, %v715_v8  ;;  %v287_v9 = vsel %vm284_vm0, 0.0, %v750_v61 }
  0x95   : > { %v791_v25 = vpack.i.bf16 %v381_v21, %v379_v20  ;;  %v765_v21 = vunpack.i.h.bf16 %v910_v16 }
  0x97   : > { %v743_v26 = vpop.permute.xlu1 %742  ;;  %v728_v27 = vpop.permute.xlu0 %727  ;;  %792 = vrot.lane.b32.xlu2 %v791_v25, %s837_s20 }
  0x98   : > { %v745_v28 = vunpack.i.h.bf16 %v743_v26  ;;  %v744_v29 = vunpack.i.l.bf16 %v743_v26  ;;  %v730_v30 = vunpack.i.h.bf16 %v728_v27  ;;  %v729_v31 = vunpack.i.l.bf16 %v728_v27 }
  0x99   : > { %v292_v26 = vsel %vm284_vm0, 0.0, %v765_v21  ;;  %v290_v27 = vsel %vm284_vm0, 0.0, %v764_v22 }
  0x9a   : > { %v363_v36 = vsel %vm349_vm1, %v298_v35, %v744_v29  ;;  %v365_v37 = vsel %vm349_vm1, %v300_v34, %v745_v28  ;;  %v361_v38 = vsel %vm349_vm1, %v296_v32, %v730_v30  ;;  %v359_v39 = vsel %vm349_vm1, %v294_v33, %v729_v31  ;;  %v473_v32 = vld [vmem:[%s1045_s1 + $0x10] sm:$0x3] }
  0x9b   : > { %v926_v40 = vsel %vm366_vm2, %v363_v36, %v744_v29  ;;  %v382_v41 = vsel %vm366_vm2, %v365_v37, %v745_v28  ;;  %v930_v42 = vsel %vm366_vm2, %v359_v39, %v729_v31  ;;  %v933_v43 = vsel %vm366_vm2, %v361_v38, %v730_v30  ;;  %v645_v36 = vld [vmem:[%s1045_s1 + $0x8] sm:$0xff]  ;;  %v644_v37 = vld [vmem:[%s1045_s1] sm:$0xff] }
  0x9c   : > { %v801_v44 = vpack.i.bf16 %v382_v41, %v926_v40  ;;  %v796_v45 = vpack.i.bf16 %v933_v43, %v930_v42  ;;  %v487_v33 = vunpack.c.l.b16 %v473_v32 }
  0x9e   : > { %802 = vrot.lane.b32.xlu1 %v801_v44, %s838_s21  ;;  %797 = vrot.lane.b32.xlu0 %v796_v45, %s838_s21  ;;  %v490_v34 = vpack.c.b16 %v487_v33, %v487_v33 }
  0x9f   : > { %v753_v47 = vpop.permute.xlu0 %752  ;;  %v758_v48 = vpop.permute.xlu1 %757 }
  0xa0   : > { %v760_v51 = vunpack.i.h.bf16 %v758_v48  ;;  %v759_v52 = vunpack.i.l.bf16 %v758_v48  ;;  %v755_v55 = vunpack.i.h.bf16 %v753_v47  ;;  %v754_v56 = vunpack.i.l.bf16 %v753_v47 }
  0xa1   : > { %v508_v35 = vsel %vm506_vm3, %v490_v34, 0 }
  0xa2   : > { %v288_v53 = vsel %vm284_vm0, 0.0, %v760_v51  ;;  %v286_v54 = vsel %vm284_vm0, 0.0, %v759_v52  ;;  %v291_v1 = vsel %vm284_vm0, 0.0, %v755_v55  ;;  %v289_v2 = vsel %vm284_vm0, 0.0, %v754_v56  ;;  %686 = vmatpush.bf16.msra.mxu2 %v508_v35  ;;  %687 = vmatpush.bf16.msra.mxu3 %v508_v35 }
  0xa3   : > { %v353_v57 = vsel %vm349_vm1, %v288_v53, %v780_v49  ;;  %v351_v58 = vsel %vm349_vm1, %v286_v54, %v779_v50  ;;  %515 = vmatpush.bf16.msra.mxu0 %v508_v35  ;;  %685 = vmatpush.bf16.msra.mxu1 %v508_v35 }
  0xa4   : > { %v945_v59 = vsel %vm366_vm2, %v351_v58, %v779_v50  ;;  %v948_v60 = vsel %vm366_vm2, %v353_v57, %v780_v49 }
  0xa5   : > { %v816_v63 = vpack.i.bf16 %v948_v60, %v945_v59 }
  0xa6   : > { %689 = vmatpush.bf16.msra.mxu2 %v645_v36  ;;  %690 = vmatpush.bf16.msra.mxu3 %v645_v36 }
  0xa7   : > { %v773_v3 = vpop.permute.xlu1 %772  ;;  %v768_v4 = vpop.permute.xlu0 %767  ;;  %817 = vrot.lane.b32.xlu1 %v816_v63, %s838_s21  ;;  %516 = vmatpush.bf16.msra.mxu0 %v645_v36 }
  0xa8   : > { %v775_v5 = vunpack.i.h.bf16 %v773_v3  ;;  %v774_v6 = vunpack.i.l.bf16 %v773_v3  ;;  %v770_v7 = vunpack.i.h.bf16 %v768_v4  ;;  %v769_v8 = vunpack.i.l.bf16 %v768_v4  ;;  %688 = vmatpush.bf16.msra.mxu1 %v645_v36 }
  0xaa   : > { %v356_v0 = vsel %vm349_vm1, %v291_v1, %v775_v5  ;;  %v354_v11 = vsel %vm349_vm1, %v289_v2, %v774_v6  ;;  %v350_v12 = vsel %vm349_vm1, %v285_v10, %v769_v8  ;;  %v352_v13 = vsel %vm349_vm1, %v287_v9, %v770_v7  ;;  %692 = vmatpush.bf16.msra.mxu2 %v644_v37 }
  0xab   : > { %v371_v14 = vsel %vm366_vm2, %v354_v11, %v774_v6  ;;  %v373_v15 = vsel %vm366_vm2, %v356_v0, %v775_v5  ;;  %v367_v17 = vsel %vm366_vm2, %v350_v12, %v769_v8  ;;  %v369_v18 = vsel %vm366_vm2, %v352_v13, %v770_v7  ;;  %693 = vmatpush.bf16.msra.mxu3 %v644_v37 }
  0xac   : > { %v811_v19 = vpack.i.bf16 %v373_v15, %v371_v14  ;;  %v806_v20 = vpack.i.bf16 %v369_v18, %v367_v17  ;;  %517 = vmatpush.bf16.msra.mxu0 %v644_v37  ;;  %691 = vmatpush.bf16.msra.mxu1 %v644_v37 }
  0xae   : > { %812 = vrot.lane.b32.xlu0 %v811_v19, %s837_s20  ;;  %807 = vrot.lane.b32.xlu2 %v806_v20, %s837_s20  ;;  %v826_v20 = vld [vmem:[%s1046_s2] ss:$0 sm:$0xff] }
  0xaf   : > { %v783_v23 = vpop.permute.xlu0 %782 }
  0xb0   : > { %v785_v24 = vunpack.i.h.bf16 %v783_v23  ;;  %v784_v25 = vunpack.i.l.bf16 %v783_v23 }
  0xb2   : > { %v355_v28 = vsel %vm349_vm1, %v290_v27, %v784_v25  ;;  %v357_v29 = vsel %vm349_vm1, %v292_v26, %v785_v24 }
  0xb3   : > { %v976_v30 = vsel %vm366_vm2, %v355_v28, %v784_v25  ;;  %v374_v16 = vsel %vm366_vm2, %v357_v29, %v785_v24 }
  0xb4   : > { %v821_v31 = vpack.i.bf16 %v374_v16, %v976_v30 }
  0xb6   : > { %822 = vrot.lane.b32.xlu2 %v821_v31, %s838_s21 }
  0xf1   : > { %v793_v39 = vpop.permute.xlu2 %792 }
  0xf2   : > { %v795_v41 = vunpack.i.h.bf16 %v793_v39  ;;  %v794_v44 = vunpack.i.l.bf16 %v793_v39 }
  0xf4   : > { %v463_v47 = vsel %vm391_vm4, %v926_v40, %v795_v41  ;;  %v453_v54 = vsel %vm391_vm4, %v933_v43, %v794_v44 }
 0x101   : > { %v788_v38 = vpop.permute.xlu1 %787 }
 0x102   : > { %v790_v45 = vunpack.i.h.bf16 %v788_v38  ;;  %v789_v46 = vunpack.i.l.bf16 %v788_v38 }
 0x104   : > { %v443_v55 = vsel %vm391_vm4, %v930_v42, %v790_v45  ;;  %v433_v56 = vsel %vm391_vm4, %v374_v16, %v789_v46 }
 0x108   : > { %v808_v62 = vpop.permute.xlu2 %807 }
 0x109   : > { %v810_v43 = vunpack.i.h.bf16 %v808_v62  ;;  %v809_v42 = vunpack.i.l.bf16 %v808_v62 }
 0x10b   : > { %v403_v5 = vsel %vm391_vm4, %v945_v59, %v810_v43  ;;  %v392_v6 = vsel %vm391_vm4, 0.0, %v809_v42 }
 0x110   : > { %v803_v48 = vpop.permute.xlu1 %802  ;;  %v798_v49 = vpop.permute.xlu0 %797 }
 0x111   : > { %v805_v50 = vunpack.i.h.bf16 %v803_v48  ;;  %v804_v51 = vunpack.i.l.bf16 %v803_v48  ;;  %v800_v52 = vunpack.i.h.bf16 %v798_v49  ;;  %v799_v53 = vunpack.i.l.bf16 %v798_v49  ;;  %v823_v10 = vpop.permute.xlu2 %822 }
 0x112   : > { %v825_v13 = vunpack.i.h.bf16 %v823_v10  ;;  %v824_v14 = vunpack.i.l.bf16 %v823_v10 }
 0x113   : > { %v434_v57 = vsel %vm393_vm5, %v433_v56, %v799_v53  ;;  %v444_v40 = vsel %vm393_vm5, %v443_v55, %v800_v52  ;;  %v454_v58 = vsel %vm393_vm5, %v453_v54, %v804_v51  ;;  %v464_v61 = vsel %vm393_vm5, %v463_v47, %v805_v50 }
 0x114   : > { %v467_v63 = vpack.c.bf16 %v444_v40, %v434_v57  ;;  %v468_v1 = vpack.c.bf16 %v464_v61, %v454_v58 }
 0x116   : > { %638 = vmatmul.msk.bf16.vlgmr.msra.gmra.mxu2 %vm493_vm6, %v467_v63  ;;  %639 = vmatmul.msk.bf16.vlgmr.msra.gmra.mxu3 %vm493_vm6, %v468_v1 }
 0x119   : > { %v818_v2 = vpop.permute.xlu1 %817 }
 0x11a   : > { %v820_v3 = vunpack.i.h.bf16 %v818_v2  ;;  %v819_v4 = vunpack.i.l.bf16 %v818_v2 }
 0x11c   : > { %v394_v7 = vsel %vm393_vm5, %v392_v6, %v819_v4  ;;  %v404_v8 = vsel %vm393_vm5, %v403_v5, %v820_v3 }
 0x11d   : > { %v465_v9 = vpack.c.bf16 %v404_v8, %v394_v7 }
 0x11f   : > { %636 = vmatmul.msk.bf16.vlgmr.msra.gmra.mxu0 %vm493_vm6, %v465_v9 }
 0x120   : > { %v813_v0 = vpop.permute.xlu0 %812 }
 0x121   : > { %v815_v11 = vunpack.i.h.bf16 %v813_v0  ;;  %v814_v12 = vunpack.i.l.bf16 %v813_v0 }
 0x123   : > { %v413_v15 = vsel %vm391_vm4, %v948_v60, %v814_v12  ;;  %v423_v59 = vsel %vm391_vm4, %v976_v30, %v815_v11 }
 0x124   : > { %v414_v17 = vsel %vm393_vm5, %v413_v15, %v824_v14  ;;  %v424_v18 = vsel %vm393_vm5, %v423_v59, %v825_v13 }
 0x125   : > { %v466_v19 = vpack.c.bf16 %v424_v18, %v414_v17 }
 0x127   : > { %637 = vmatmul.msk.bf16.vlgmr.msra.gmra.mxu1 %vm493_vm6, %v466_v19 }
 0x199   : > { %v529_v21 = vpop.f32.mrf.mxu2  ;;  %v534_v22 = vpop.f32.mrf.mxu3 }
 0x19a   : > { %v530_v23 = vadd.f32 %v826_v20, %v529_v21  ;;  %v535_v24 = vadd.f32 %v826_v20, %v534_v22 }
 0x19c   : > { %v543_v60 = vmax.f32 %v530_v23, 0.0  ;;  %v545_v25 = vmax.f32 %v535_v24, 0.0  ;;  %v519_v26 = vpop.f32.mrf.mxu0 }
 0x19d   : > { %v520_v27 = vadd.f32 %v826_v20, %v519_v26 }
 0x19e   : > { %v551_v28 = vpack.c.bf16 %v543_v60, %v543_v60  ;;  %v553_v29 = vpack.c.bf16 %v545_v25, %v545_v25 }
 0x19f   : > { %v539_v30 = vmax.f32 %v520_v27, 0.0 }
 0x1a0   : > { %560 = vst.msk [vmem:[%s1023_s6 + $0x10] sm:$0xf] %vm555_vm7, %v551_v28 }
 0x1a1   : > { %562 = vst.msk [vmem:[%s1023_s6 + $0x18] sm:$0xf] %vm555_vm7, %v553_v29  ;;  %v547_v16 = vpack.c.bf16 %v539_v30, %v539_v30  ;;  %v531_v31 = vpop.f32.mrf.mxu2  ;;  %v536_v32 = vpop.f32.mrf.mxu3 }
 0x1a2   : > { %v532_v33 = vadd.f32 %v826_v20, %v531_v31  ;;  %v537_v34 = vadd.f32 %v826_v20, %v536_v32 }
 0x1a3   : > { %556 = vst.msk [vmem:[%s1023_s6] sm:$0xf] %vm555_vm7, %v547_v16 }
 0x1a4   : > { %v544_v35 = vmax.f32 %v532_v33, 0.0  ;;  %v546_v36 = vmax.f32 %v537_v34, 0.0  ;;  %v521_v37 = vpop.f32.mrf.mxu0  ;;  %v524_v38 = vpop.f32.mrf.mxu1 }
 0x1a5   : > { %v522_v39 = vadd.f32 %v826_v20, %v521_v37  ;;  %v525_v41 = vadd.f32 %v826_v20, %v524_v38 }
 0x1a6   : > { %v552_v44 = vpack.c.bf16 %v544_v35, %v544_v35  ;;  %v554_v45 = vpack.c.bf16 %v546_v36, %v546_v36 }
 0x1a7   : > { %v540_v46 = vmax.f32 %v522_v39, 0.0  ;;  %v541_v47 = vmax.f32 %v525_v41, 0.0 }
 0x1a8   : > { %561 = vst.msk [vmem:[%s1023_s6 + $0x14] sm:$0xf] %vm555_vm7, %v552_v44 }
 0x1a9   : > { %563 = vst.msk [vmem:[%s1023_s6 + $0x1c] sm:$0xf] %vm555_vm7, %v554_v45  ;;  %v548_v48 = vpack.c.bf16 %v540_v46, %v540_v46  ;;  %v549_v49 = vpack.c.bf16 %v541_v47, %v541_v47 }
 0x1ab   : > { %557 = vst.msk [vmem:[%s1023_s6 + $0x4] sm:$0xf] %vm555_vm7, %v548_v48 }
 0x1ac   : > { %558 = vst.msk [vmem:[%s1023_s6 + $0x8] sm:$0xf] %vm555_vm7, %v549_v49  ;;  %v526_v50 = vpop.f32.mrf.mxu1 }
 0x1ad   : > { %v527_v51 = vadd.f32 %v826_v20, %v526_v50 }
 0x1af   : > { %v542_v52 = vmax.f32 %v527_v51, 0.0 }
 0x1b1   : > { %v550_v53 = vpack.c.bf16 %v542_v52, %v542_v52 }
 0x1b3   : > { %559 = vst.msk [vmem:[%s1023_s6 + $0xc] sm:$0xf] %vm555_vm7, %v550_v53 }
 0x1b4 PF: > { %s13_s12 = sadd.s32 1, %s833_s12  }
 0x1b5   : > { %p10_p4 = scmp.ge.s32.totalorder %s13_s12, 4  }
 0x1b7   :  { %12 = sbr.rel (!%p10_p4) target bundleno = 1 (0x1), region = 62 }

// kernel: cnn_encoder_forward.4
= control target key start
LH: loop header
LB: loop body
LE: loop exit
PB: predicated region body
PF: predicated region fallthrough
CT: control target
= control target key end

     0   :  { %s772_s12 = smov 0   ;;  %s889_s0 = inlined_call_operand.vmem [shape: bf16[2,8,4,32], index: 0, kind: input, shape index: {}]   ;;  %s890_s1 = inlined_call_operand.vmem [shape: bf16[144,32], index: 1, kind: input, shape index: {}]   ;;  %s891_s2 = inlined_call_operand.vmem [shape: f32[1,32], index: 2, kind: input, shape index: {}]   ;;  %s892_s3 = inlined_call_operand.vmem [shape: bf16[2,16,32], index: 3, kind: output, shape index: {}]  }
   0x1 LB: > { %s588_s13 = sadd.s32 4294967295, %s746_s12   ;;  %p592_p0 = scmp.ge.s32.totalorder %s746_s12, 1  ;;  %s746_s12 = sphi %s772_s12, %s13_s12  }
   0x2   : > { %p137_p1 = scmp.lt.s32.totalorder %s746_s12, 3 }
   0x4   : > { %p138_p2 = pnand %p592_p0, %p137_p1 }
   0x5   : > { %p161_p3 = scmp.lt.s32.totalorder (!%p138_p2), %s588_s13, 1  ;;  %s748_s18 = smov (!%p138_p2), 112  }
   0x6   : > { %141 = sbr.rel (%p138_p2) target bundleno = 446 (0x1be), region = 32  ;;  %s749_s19 = smov (!%p138_p2), 16  }
   0x7   : > { %s750_s24 = smov (!%p138_p2), 96   ;;  %s751_s25 = smov (!%p138_p2), 48  }
   0xb   : > { %s894_s13 = smov (!%p161_p3, %s588_s13), 1  ;;  %v645_v63 = vld [vmem:[%s890_s1 + $0x38] sm:$0xff]  ;;  %vm247_vm0 = vcmask 1040384   ;;  %vm342_vm1 = vcmask 130048   ;;  %vm351_vm2 = vcmask 261120   ;;  %vm368_vm3 = vcmask 392192  }
   0xc   : > { %s636_s14 = sshll.u32 %s894_s13, 4  ;;  %498 = vmatpush.bf16.msra.mxu0 %v645_v63  ;;  %v642_v63 = vld [vmem:[%s890_s1 + $0x20] sm:$0xff]  ;;  %vm370_vm4 = vcmask 785408   ;;  %vm412_vm5 = vcmask 1043456   ;;  %vm530_vm6 = vcmask 257024  }
   0xd   : > { %s165_s17 = scalar_lea.vmem %s889_s0, %s636_s14 }
   0xe   : > { %v174_v0 = vld [vmem:[%s165_s17 + $0x4] sm:$0x3]  ;;  %v172_v1 = vld [vmem:[%s165_s17] sm:$0x3]  ;;  %v175_v4 = vld [vmem:[%s165_s17 + $0x6] sm:$0x3] }
   0xf   : > { %v182_v2 = vunpack.c.l.bf16 %v174_v0  ;;  %v180_v3 = vunpack.c.l.bf16 %v172_v1  ;;  %v786_v5 = vunpack.c.l.bf16 %v175_v4  ;;  %v173_v6 = vld [vmem:[%s165_s17 + $0x2] sm:$0x3]  ;;  %v178_v8 = vld [vmem:[%s165_s17 + $0xc] sm:$0x3]  ;;  %v176_v9 = vld [vmem:[%s165_s17 + $0x8] sm:$0x3] }
  0x10   : > { %v181_v7 = vunpack.c.l.bf16 %v173_v6  ;;  %v179_v10 = vld [vmem:[%s165_s17 + $0xe] sm:$0x3]  ;;  %v186_v11 = vunpack.c.l.bf16 %v178_v8  ;;  %v177_v12 = vld [vmem:[%s165_s17 + $0xa] sm:$0x3]  ;;  %v184_v13 = vunpack.c.l.bf16 %v176_v9  ;;  %v644_v1 = vld [vmem:[%s890_s1 + $0x30] sm:$0xff]  ;;  %s637_s17 = sshll.u32 %s894_s13, 3 }
  0x11   : > { %202 = vst [vmem:[#allocation1 + $0x20] ss:$2 sm:$0xff] %v182_v2  ;;  %v789_v14 = vunpack.c.l.bf16 %v179_v10  ;;  %v791_v16 = vunpack.c.l.bf16 %v177_v12  ;;  %499 = vmatpush.bf16.msra.mxu0 %v644_v1  ;;  %v640_v1 = vld [vmem:[%s890_s1 + $0x10] sm:$0xff]  ;;  %s170_s20 = scalar_lea.vmem %s892_s3, %s637_s17 }
  0x12   : > { %196 = vst [vmem:[#allocation1] ss:$2 sm:$0xff] %v180_v3 }
  0x13   : > { %205 = vst [vmem:[#allocation1 + $0x30] ss:$2 sm:$0xff] %v786_v5 }
  0x14   : > { %199 = vst [vmem:[#allocation1 + $0x10] ss:$2 sm:$0xff] %v181_v7 }
  0x18   : > { %v203_v15 = vld.sshfl [vmem:[#allocation1 + $0x20] sm:$0xff pattern:$0x75316420] }
  0x19   : > { %211 = vst [vmem:[#allocation1 + $0x20] ss:$2 sm:$0xff] %v186_v11  ;;  %v197_v17 = vld.sshfl [vmem:[#allocation1] sm:$0xff pattern:$0x75316420]  ;;  %v217_v20 = vrot.slane %v203_v15, 7 }
  0x1a   : > { %207 = vst [vmem:[#allocation1] ss:$2 sm:$0xff] %v184_v13  ;;  %v206_v18 = vld.sshfl [vmem:[#allocation1 + $0x30] sm:$0xff pattern:$0x75316420]  ;;  %v215_v22 = vrot.slane %v197_v17, 7 }
  0x1b   : > { %213 = vst [vmem:[#allocation1 + $0x30] ss:$2 sm:$0xff] %v789_v14  ;;  %v200_v19 = vld.sshfl [vmem:[#allocation1 + $0x10] sm:$0xff pattern:$0x75316420]  ;;  %v218_v30 = vrot.slane %v206_v18, 7 }
  0x1c   : > { %209 = vst [vmem:[#allocation1 + $0x10] ss:$2 sm:$0xff] %v791_v16  ;;  %v216_v37 = vrot.slane %v200_v19, 7 }
  0x20   : > { %v212_v21 = vld.sshfl [vmem:[#allocation1 + $0x20] sm:$0xff pattern:$0x75316420] }
  0x21   : > { %v221_v23 = vrot.slane %v212_v21, 7  ;;  %262 = vst [vmem:[#allocation1 + $0x20] ss:$2 sm:$0xff] %v182_v2  ;;  %v208_v24 = vld.sshfl [vmem:[#allocation1] sm:$0xff pattern:$0x75316420] }
  0x22   : > { %v219_v25 = vrot.slane %v208_v24, 7  ;;  %256 = vst [vmem:[#allocation1] ss:$2 sm:$0xff] %v180_v3  ;;  %v214_v26 = vld.sshfl [vmem:[#allocation1 + $0x30] sm:$0xff pattern:$0x75316420] }
  0x23   : > { %v659_v27 = vpack.i.bf16 %v221_v23, %v217_v20  ;;  %265 = vst [vmem:[#allocation1 + $0x30] ss:$2 sm:$0xff] %v786_v5  ;;  %v210_v28 = vld.sshfl [vmem:[#allocation1 + $0x10] sm:$0xff pattern:$0x75316420]  ;;  %v222_v31 = vrot.slane %v214_v26, 7 }
  0x24   : > { %v669_v29 = vpack.i.bf16 %v219_v25, %v215_v22  ;;  %259 = vst [vmem:[#allocation1 + $0x10] ss:$2 sm:$0xff] %v181_v7  ;;  %v220_v38 = vrot.slane %v210_v28, 7 }
  0x25   : > { %660 = vrot.lane.b32.xlu0 %v659_v27, %s748_s18  ;;  %v664_v33 = vpack.i.bf16 %v222_v31, %v218_v30 }
  0x26   : > { %670 = vrot.lane.b32.xlu1 %v669_v29, %s748_s18  ;;  %v674_v41 = vpack.i.bf16 %v220_v38, %v216_v37 }
  0x28   : > { %v263_v32 = vld.sshfl [vmem:[#allocation1 + $0x20] sm:$0xff pattern:$0x75316420] }
  0x29   : > { %271 = vst [vmem:[#allocation1 + $0x20] ss:$2 sm:$0xff] %v186_v11  ;;  %v257_v34 = vld.sshfl [vmem:[#allocation1] sm:$0xff pattern:$0x75316420] }
  0x2a   : > { %v266_v35 = vld.sshfl [vmem:[#allocation1 + $0x30] sm:$0xff pattern:$0x75316420]  ;;  %267 = vst [vmem:[#allocation1] ss:$2 sm:$0xff] %v184_v13 }
  0x2b   : > { %273 = vst [vmem:[#allocation1 + $0x30] ss:$2 sm:$0xff] %v789_v14  ;;  %v260_v36 = vld.sshfl [vmem:[#allocation1 + $0x10] sm:$0xff pattern:$0x75316420] }
  0x2c   : > { %269 = vst [vmem:[#allocation1 + $0x10] ss:$2 sm:$0xff] %v791_v16 }
  0x2d   : > { %665 = vrot.lane.b32.xlu0 %v664_v33, %s748_s18 }
  0x30   : > { %v272_v39 = vld.sshfl [vmem:[#allocation1 + $0x20] sm:$0xff pattern:$0x75316420] }
  0x31   : > { %v679_v40 = vpack.i.bf16 %v272_v39, %v263_v32  ;;  %305 = vst [vmem:[#allocation1 + $0x20] ss:$2 sm:$0xff] %v182_v2  ;;  %v268_v42 = vld.sshfl [vmem:[#allocation1] sm:$0xff pattern:$0x75316420] }
  0x32   : > { %v274_v43 = vld.sshfl [vmem:[#allocation1 + $0x30] sm:$0xff pattern:$0x75316420]  ;;  %299 = vst [vmem:[#allocation1] ss:$2 sm:$0xff] %v180_v3  ;;  %v689_v46 = vpack.i.bf16 %v268_v42, %v257_v34 }
  0x33   : > { %680 = vrot.lane.b32.xlu1 %v679_v40, %s749_s19  ;;  %v684_v44 = vpack.i.bf16 %v274_v43, %v266_v35  ;;  %308 = vst [vmem:[#allocation1 + $0x30] ss:$2 sm:$0xff] %v786_v5  ;;  %v270_v45 = vld.sshfl [vmem:[#allocation1 + $0x10] sm:$0xff pattern:$0x75316420] }
  0x34   : > { %302 = vst [vmem:[#allocation1 + $0x10] ss:$2 sm:$0xff] %v181_v7  ;;  %v694_v48 = vpack.i.bf16 %v270_v45, %v260_v36 }
  0x35   : > { %675 = vrot.lane.b32.xlu0 %v674_v41, %s748_s18  ;;  %685 = vrot.lane.b32.xlu2 %v684_v44, %s749_s19 }
  0x38   : > { %v306_v47 = vld.sshfl [vmem:[#allocation1 + $0x20] sm:$0xff pattern:$0x75316420] }
  0x39   : > { %314 = vst [vmem:[#allocation1 + $0x20] ss:$2 sm:$0xff] %v186_v11  ;;  %v300_v49 = vld.sshfl [vmem:[#allocation1] sm:$0xff pattern:$0x75316420] }
  0x3a   : > { %310 = vst [vmem:[#allocation1] ss:$2 sm:$0xff] %v184_v13  ;;  %v309_v50 = vld.sshfl [vmem:[#allocation1 + $0x30] sm:$0xff pattern:$0x75316420] }
  0x3b   : > { %690 = vrot.lane.b32.xlu1 %v689_v46, %s749_s19  ;;  %316 = vst [vmem:[#allocation1 + $0x30] ss:$2 sm:$0xff] %v789_v14  ;;  %v303_v51 = vld.sshfl [vmem:[#allocation1 + $0x10] sm:$0xff pattern:$0x75316420] }
  0x3c   : > { %312 = vst [vmem:[#allocation1 + $0x10] ss:$2 sm:$0xff] %v791_v16 }
  0x3d   : > { %695 = vrot.lane.b32.xlu0 %v694_v48, %s749_s19 }
  0x40   : > { %v315_v52 = vld.sshfl [vmem:[#allocation1 + $0x20] sm:$0xff pattern:$0x75316420] }
  0x41   : > { %v699_v53 = vpack.i.bf16 %v315_v52, %v306_v47  ;;  %v311_v54 = vld.sshfl [vmem:[#allocation1] sm:$0xff pattern:$0x75316420] }
  0x42   : > { %v709_v55 = vpack.i.bf16 %v311_v54, %v300_v49  ;;  %v317_v56 = vld.sshfl [vmem:[#allocation1 + $0x30] sm:$0xff pattern:$0x75316420] }
  0x43   : > { %700 = vrot.lane.b32.xlu2 %v699_v53, %s749_s19  ;;  %v704_v57 = vpack.i.bf16 %v317_v56, %v309_v50  ;;  %v313_v58 = vld.sshfl [vmem:[#allocation1 + $0x10] sm:$0xff pattern:$0x75316420] }
  0x44   : > { %710 = vrot.lane.b32.xlu1 %v709_v55, %s749_s19  ;;  %v714_v59 = vpack.i.bf16 %v313_v58, %v303_v51 }
  0x4b   : > { %705 = vrot.lane.b32.xlu2 %v704_v57, %s749_s19 }
  0x53   : > { %715 = vrot.lane.b32.xlu2 %v714_v59, %s749_s19 }
  0x8f   : > { %v686_v60 = vpop.permute.xlu2 %685 }
  0x90   : > { %v688_v7 = vunpack.i.h.bf16 %v686_v60  ;;  %v687_v8 = vunpack.i.l.bf16 %v686_v60 }
  0x97   : > { %v661_v61 = vpop.permute.xlu0 %660 }
  0x98   : > { %v809_v62 = vpop.permute.xlu1 %670  ;;  %v663_v5 = vunpack.i.h.bf16 %v661_v61  ;;  %v662_v6 = vunpack.i.l.bf16 %v661_v61 }
  0x99   : > { %v673_v45 = vunpack.i.h.bf16 %v809_v62  ;;  %v672_v46 = vunpack.i.l.bf16 %v809_v62  ;;  %v643_v62 = vld [vmem:[%s890_s1 + $0x28] sm:$0xff] }
  0x9a   : > { %v254_v17 = vsel %vm247_vm0, 0.0, %v663_v5  ;;  %v250_v18 = vsel %vm247_vm0, 0.0, %v662_v6  ;;  %500 = vmatpush.bf16.msra.mxu0 %v643_v62 }
  0x9b   : > { %v252_v53 = vsel %vm247_vm0, 0.0, %v673_v45  ;;  %v248_v54 = vsel %vm247_vm0, 0.0, %v672_v46 }
  0x9d   : > { %v701_v0 = vpop.permute.xlu2 %700 }
  0x9e   : > { %v703_v19 = vunpack.i.h.bf16 %v701_v0  ;;  %v702_v20 = vunpack.i.l.bf16 %v701_v0  ;;  %501 = vmatpush.bf16.msra.mxu0 %v642_v63  ;;  %v641_v0 = vld [vmem:[%s890_s1 + $0x18] sm:$0xff] }
  0x9f   : > { %v666_v2 = vpop.permute.xlu0 %665 }
  0xa0   : > { %v668_v3 = vunpack.i.h.bf16 %v666_v2  ;;  %v667_v4 = vunpack.i.l.bf16 %v666_v2  ;;  %v639_v2 = vld [vmem:[%s890_s1 + $0x8] sm:$0xff] }
  0xa2   : > { %v255_v9 = vsel %vm247_vm0, 0.0, %v668_v3  ;;  %v251_v10 = vsel %vm247_vm0, 0.0, %v667_v4  ;;  %502 = vmatpush.bf16.msra.mxu0 %v641_v0  ;;  %v646_v3 = vld [vmem:[%s890_s1 + $0x40] sm:$0xff] }
  0xa3   : > { %v350_v22 = vsel %vm342_vm1, %v255_v9, %v688_v7  ;;  %v346_v23 = vsel %vm342_vm1, %v251_v10, %v687_v8  ;;  %v638_v4 = vld [vmem:[%s890_s1] sm:$0xff]  ;;  %519 = vmatpush.bf16.msra.mxu1 %v646_v3 }
  0xa5   : > { %v706_v11 = vpop.permute.xlu2 %705  ;;  %v681_v12 = vpop.permute.xlu1 %680 }
  0xa6   : > { %v708_v13 = vunpack.i.h.bf16 %v706_v11  ;;  %v707_v14 = vunpack.i.l.bf16 %v706_v11  ;;  %v683_v15 = vunpack.i.h.bf16 %v681_v12  ;;  %v682_v16 = vunpack.i.l.bf16 %v681_v12  ;;  %503 = vmatpush.bf16.msra.mxu0 %v640_v1 }
  0xa7   : > { %v676_v21 = vpop.permute.xlu0 %675 }
  0xa8   : > { %v349_v24 = vsel %vm342_vm1, %v254_v17, %v683_v15  ;;  %v345_v25 = vsel %vm342_vm1, %v250_v18, %v682_v16  ;;  %v826_v26 = vsel %vm351_vm2, %v346_v23, %v707_v14  ;;  %v359_v27 = vsel %vm351_vm2, %v350_v22, %v708_v13 }
  0xa9   : > { %v354_v28 = vsel %vm351_vm2, %v345_v25, %v702_v20  ;;  %v358_v29 = vsel %vm351_vm2, %v349_v24, %v703_v19  ;;  %v724_v30 = vpack.i.bf16 %v359_v27, %v826_v26  ;;  %v678_v32 = vunpack.i.h.bf16 %v676_v21 }
  0xaa   : > { %v719_v31 = vpack.i.bf16 %v358_v29, %v354_v28  ;;  %v677_v33 = vunpack.i.l.bf16 %v676_v21  ;;  %504 = vmatpush.bf16.msra.mxu0 %v639_v2 }
  0xab   : > { %725 = vrot.lane.b32.xlu1 %v724_v30, %s750_s24  ;;  %v253_v41 = vsel %vm247_vm0, 0.0, %v678_v32 }
  0xac   : > { %720 = vrot.lane.b32.xlu0 %v719_v31, %s751_s25  ;;  %v249_v42 = vsel %vm247_vm0, 0.0, %v677_v33 }
  0xad   : > { %v691_v34 = vpop.permute.xlu1 %690  ;;  %v716_v35 = vpop.permute.xlu2 %715 }
  0xae   : > { %v718_v37 = vunpack.i.h.bf16 %v716_v35  ;;  %v717_v38 = vunpack.i.l.bf16 %v716_v35  ;;  %v693_v49 = vunpack.i.h.bf16 %v691_v34  ;;  %v692_v50 = vunpack.i.l.bf16 %v691_v34  ;;  %505 = vmatpush.bf16.msra.mxu0 %v638_v4 }
  0xaf   : > { %v696_v36 = vpop.permute.xlu0 %695 }
  0xb0   : > { %v698_v39 = vunpack.i.h.bf16 %v696_v36  ;;  %v697_v40 = vunpack.i.l.bf16 %v696_v36  ;;  %v343_v57 = vsel %vm342_vm1, %v248_v54, %v692_v50  ;;  %v347_v58 = vsel %vm342_vm1, %v252_v53, %v693_v49 }
  0xb2   : > { %v344_v43 = vsel %vm342_vm1, %v249_v42, %v697_v40  ;;  %v348_v44 = vsel %vm342_vm1, %v253_v41, %v698_v39 }
  0xb3   : > { %v353_v47 = vsel %vm351_vm2, %v344_v43, %v717_v38  ;;  %v357_v48 = vsel %vm351_vm2, %v348_v44, %v718_v37 }
  0xb4   : > { %v734_v51 = vpack.i.bf16 %v357_v48, %v353_v47 }
  0xb6   : > { %v711_v52 = vpop.permute.xlu1 %710  ;;  %735 = vrot.lane.b32.xlu0 %v734_v51, %s750_s24 }
  0xb7   : > { %v713_v55 = vunpack.i.h.bf16 %v711_v52  ;;  %v712_v56 = vunpack.i.l.bf16 %v711_v52 }
  0xb9   : > { %v352_v59 = vsel %vm351_vm2, %v343_v57, %v712_v56  ;;  %v356_v60 = vsel %vm351_vm2, %v347_v58, %v713_v55 }
  0xba   : > { %v729_v61 = vpack.i.bf16 %v356_v60, %v352_v59 }
  0xbc   : > { %730 = vrot.lane.b32.xlu2 %v729_v61, %s751_s25 }
 0x116   : > { %v731_v9 = vpop.permute.xlu2 %730 }
 0x117   : > { %v733_v14 = vunpack.i.h.bf16 %v731_v9  ;;  %v732_v15 = vunpack.i.l.bf16 %v731_v9 }
 0x119   : > { %v390_v23 = vsel %vm368_vm3, %v826_v26, %v733_v14  ;;  %v369_v24 = vsel %vm368_vm3, 0.0, %v732_v15  ;;  %v739_v26 = vld [vmem:[%s891_s2] ss:$0 sm:$0xff] }
 0x11d   : > { %v726_v8 = vpop.permute.xlu1 %725 }
 0x11e   : > { %v721_v5 = vpop.permute.xlu0 %720  ;;  %v728_v12 = vunpack.i.h.bf16 %v726_v8  ;;  %v727_v13 = vunpack.i.l.bf16 %v726_v8 }
 0x11f   : > { %v723_v6 = vunpack.i.h.bf16 %v721_v5  ;;  %v722_v7 = vunpack.i.l.bf16 %v721_v5 }
 0x120   : > { %v409_v19 = vrot.slane %v728_v12, 4  ;;  %v404_v20 = vrot.slane %v727_v13, 4 }
 0x121   : > { %v400_v10 = vsel %vm368_vm3, %v357_v48, %v723_v6  ;;  %v380_v11 = vsel %vm368_vm3, %v353_v47, %v722_v7 }
 0x122   : > { %v381_v16 = vsel %vm370_vm4, %v380_v11, %v727_v13  ;;  %v401_v17 = vsel %vm370_vm4, %v400_v10, %v728_v12 }
 0x123   : > { %v403_v25 = vrot.slane %v381_v16, 4  ;;  %v408_v27 = vrot.slane %v401_v17, 4 }
 0x128   : > { %v736_v18 = vpop.permute.xlu0 %735 }
 0x129   : > { %v738_v21 = vunpack.i.h.bf16 %v736_v18  ;;  %v737_v22 = vunpack.i.l.bf16 %v736_v18 }
 0x12b   : > { %v414_v28 = vsel %vm412_vm5, %v737_v22, %v404_v20  ;;  %v416_v29 = vsel %vm412_vm5, %v738_v21, %v409_v19  ;;  %v371_v30 = vsel %vm370_vm4, %v369_v24, %v737_v22  ;;  %v391_v31 = vsel %vm370_vm4, %v390_v23, %v738_v21 }
 0x12c   : > { %v418_v32 = vpack.c.bf16 %v416_v29, %v414_v28  ;;  %v413_v33 = vsel %vm412_vm5, %v371_v30, %v403_v25  ;;  %v415_v34 = vsel %vm412_vm5, %v391_v31, %v408_v27 }
 0x12d   : > { %v417_v35 = vpack.c.bf16 %v415_v34, %v413_v33 }
 0x12e   : > { %633 = vmatmul.msk.bf16.vlgmr.msra.gmra.mxu1 %vm342_vm1, %v418_v32 }
 0x12f   : > { %506 = vmatmul.bf16.vlgmr.msra.gmra.mxu0 %v417_v35 }
 0x1ab   : > { %v521_v36 = vpop.f32.mrf.mxu1 }
 0x1ac   : > { %v507_v37 = vpop.f32.mrf.mxu0 }
 0x1ad   : > { %v508_v38 = vadd.f32 %v739_v26, %v507_v37 }
 0x1af   : > { %v522_v39 = vadd.f32 %v521_v36, %v508_v38 }
 0x1b1   : > { %v526_v40 = vmax.f32 %v522_v39, 0.0 }
 0x1b3   : > { %v528_v41 = vpack.c.bf16 %v526_v40, %v526_v40  ;;  %v523_v44 = vpop.f32.mrf.mxu1 }
 0x1b4   : > { %v509_v42 = vpop.f32.mrf.mxu0 }
 0x1b5   : > { %531 = vst.msk [vmem:[%s170_s20] sm:$0xf] %vm530_vm6, %v528_v41  ;;  %v510_v43 = vadd.f32 %v739_v26, %v509_v42 }
 0x1b7   : > { %v524_v45 = vadd.f32 %v523_v44, %v510_v43 }
 0x1b9   : > { %v527_v46 = vmax.f32 %v524_v45, 0.0 }
 0x1bb   : > { %v529_v47 = vpack.c.bf16 %v527_v46, %v527_v46 }
 0x1bd   : > { %532 = vst.msk [vmem:[%s170_s20 + $0x4] sm:$0xf] %vm530_vm6, %v529_v47 }
 0x1be PF: > { %s13_s12 = sadd.s32 1, %s746_s12  }
 0x1bf   : > { %p10_p4 = scmp.ge.s32.totalorder %s13_s12, 4  }
 0x1c1   :  { %12 = sbr.rel (!%p10_p4) target bundleno = 1 (0x1), region = 71 }

// kernel: cnn_encoder_forward.5
= control target key start
LH: loop header
LB: loop body
LE: loop exit
PB: predicated region body
PF: predicated region fallthrough
CT: control target
= control target key end

     0   :  { %8 = vsyncpa [#allocation3], 0  ;;  %s986_s0 = inlined_call_operand.vmem [shape: bf16[2,4,2,64], index: 0, kind: input, shape index: {}]   ;;  %s987_s1 = inlined_call_operand.vmem [shape: bf16[288,64], index: 1, kind: input, shape index: {}]   ;;  %s988_s2 = inlined_call_operand.vmem [shape: f32[1,64], index: 2, kind: input, shape index: {}]   ;;  %s989_s3 = inlined_call_operand.hbm [shape: f32[2,4,64], index: 3, kind: output, shape index: {}]  }
   0x1   :  { %10 = vsyncpa [#allocation3 + $0x1], 0  ;;  %s826_s12 = smov 0   ;;  %s828_s13 = smov 0  }
   0x2   :  { %s830_s14 = smov 0   ;;  %s832_s15 = smov 0  }
   0x3 LB: > { %s847_s16 = sadd.s32 4294967295, %s801_s15   ;;  %s555_s17 = sadd.s32 4294967294, %s801_s15   ;;  %s801_s15 = sphi %s832_s15, %s995_s15   ;;  %s797_s14 = sphi %s830_s14, %s994_s14   ;;  %s793_s13 = sphi %s828_s13, %s993_s13   ;;  %s789_s12 = sphi %s826_s12, %s992_s12  }
   0x4   : > { %s851_s18 = sadd.s32 1, %s801_s15   ;;  %s91_s19 = sadd.s32 1, %s797_s14 }
   0x5   : > { %s88_s20 = ssub.s32 %s801_s15, %s851_s18  ;;  %p101_p0 = scmp.ne.s32.totalorder %s797_s14, %s793_s13 }
   0x6   : > { %p89_p1 = scmp.eq.s32.totalorder %s88_s20, 0  ;;  %p102_p2 = scmp.eq.s32.totalorder %s847_s16, 1 }
   0x7   : > { %p107_p3 = scmp.ne.s32.totalorder %s793_s13, %s789_s12  ;;  %p108_p4 = scmp.eq.s32.totalorder %s555_s17, 1 }
   0x8   : > { %s862_s21 = scalar_select %p89_p1, %s797_s14, %s91_s19  }
   0x9   : > { %p864_p5 = por %p102_p2, %p101_p0  ;;  %p868_p6 = por %p108_p4, %p107_p3 }
   0xa   : > { %p558_p7 = scmp.ge.s32.totalorder %s801_s15, 1  ;;  %p139_p8 = scmp.lt.s32.totalorder %s801_s15, 3 }
   0xc   : > { %p140_p9 = pnand %p558_p7, %p139_p8 }
   0xd   : > { %p162_p10 = scmp.lt.s32.totalorder (!%p140_p9), %s847_s16, 1  ;;  %s803_s29 = smov (!%p140_p9), 96  }
   0xe   : > { %143 = sbr.rel (%p140_p9) target bundleno = 443 (0x1bb), region = 32  ;;  %s804_s30 = smov (!%p140_p9), 32  }
   0xf   : > { %s805_s11 = smov (!%p140_p9), 64   ;;  %s159_s6 = sand.u32 (!%p140_p9), 1, %s793_s13  }
  0x10   : > { %s635_s7 = sshll.u32 (!%p140_p9), %s847_s16, 2  ;;  %s559_s10 = sshll.u32 (!%p140_p9), %s159_s6, 2 }
  0x11   : > { %s491_s19 = scalar_lea.hbm (!%p140_p9), %s989_s3, %s635_s7  ;;  %s161_s20 = scalar_lea.vmem (!%p140_p9), [#allocation2], %s559_s10 }
  0x13   : > { %s163_s24 = scalar_select %p162_p10, %s847_s16, 1  ;;  %v645_v26 = vld [vmem:[%s987_s1 + $0x38] sm:$0xff]  ;;  %v644_v28 = vld [vmem:[%s987_s1 + $0x30] sm:$0xff]  ;;  %v643_v30 = vld [vmem:[%s987_s1 + $0x28] sm:$0xff]  ;;  %vm195_vm0 = vcmask 1040384   ;;  %vm242_vm1 = vcmask 261120  }
  0x14   : > { %v653_v27 = vld [vmem:[%s987_s1 + $0x78] sm:$0xff]  ;;  %439 = vmatpush.bf16.msra.mxu0 %v645_v26  ;;  %v652_v29 = vld [vmem:[%s987_s1 + $0x70] sm:$0xff]  ;;  %v651_v31 = vld [vmem:[%s987_s1 + $0x68] sm:$0xff]  ;;  %vm247_vm2 = vcmask 523264   ;;  %vm260_vm3 = vcmask 785408   ;;  %vm281_vm4 = vcmask 1041408  }
  0x15   : > { %s560_s25 = sshll.u32 %s163_s24, 2  ;;  %452 = vmatpush.bf16.msra.mxu1 %v653_v27  ;;  %v642_v32 = vld [vmem:[%s987_s1 + $0x20] sm:$0xff]  ;;  %v641_v36 = vld [vmem:[%s987_s1 + $0x18] sm:$0xff]  ;;  %v640_v40 = vld [vmem:[%s987_s1 + $0x10] sm:$0xff]  ;;  %s493_s24 = sshll.u32 %s161_s20, 4  ;;  %vm478_vm5 = vcmask 519168   ;;  %s494_s24 = int_to_ptr.vmem [resolvable:$true] %s493_s24 }
  0x16   : > { %s165_s28 = scalar_lea.vmem %s986_s0, %s560_s25  ;;  %v650_v33 = vld [vmem:[%s987_s1 + $0x60] sm:$0xff]  ;;  %v649_v37 = vld [vmem:[%s987_s1 + $0x58] sm:$0xff]  ;;  %v648_v41 = vld [vmem:[%s987_s1 + $0x50] sm:$0xff]  ;;  %s495_s25 = sshll.u32 %s491_s19, 4  ;;  %s496_s25 = int_to_ptr.hbm [resolvable:$true] %s495_s25 }
  0x17   : > { %v168_v0 = vld [vmem:[%s165_s28 + $0x1] sm:$0x1]  ;;  %v170_v1 = vld [vmem:[%s165_s28 + $0x3] sm:$0x1]  ;;  %v167_v2 = vld [vmem:[%s165_s28] sm:$0x1] }
  0x18   : > { %v172_v3 = vunpack.c.l.bf16 %v168_v0  ;;  %v174_v4 = vunpack.c.l.bf16 %v170_v1  ;;  %v171_v5 = vunpack.c.l.bf16 %v167_v2  ;;  %v169_v9 = vld [vmem:[%s165_s28 + $0x2] sm:$0x1]  ;;  %440 = vmatpush.bf16.msra.mxu0 %v644_v28  ;;  %s481_s16 = scalar_lea.sflag [#allocation3], %s159_s6  ;;  %s753_s26 = sshra.s32 %s496_s25, 4  ;;  %s754_s26 = int_to_ptr.hbm [resolvable:$true] %s753_s26 }
  0x19   : > { %v173_v10 = vunpack.c.l.bf16 %v169_v9  ;;  %453 = vmatpush.bf16.msra.mxu1 %v652_v29  ;;  %v654_v9 = vld [vmem:[%s987_s1 + $0x80] sm:$0xff]  ;;  %s755_s27 = scalar_lea.hbm %s754_s26, 4  ;;  %p760_p0 = scmp.lt.s32.totalorder %s754_s26, %s989_s3 }
  0x1a   : > { %203 = vst [vmem:[#allocation1 + $0x20] ss:$4 sm:$0xff] %v172_v3  ;;  %v180_v6 = vperm.slane %v172_v3, 0  ;;  %v182_v7 = vperm.slane %v174_v4, 0  ;;  %v179_v18 = vperm.slane %v171_v5, 0  ;;  %p756_p11 = scmp.ne.s32.totalorder %s754_s26, %s755_s27 }
  0x1b   : > { %200 = vst [vmem:[#allocation1] ss:$4 sm:$0xff] %v171_v5  ;;  %v181_v19 = vperm.slane %v173_v10, 0 }
  0x1c   : > { %v698_v8 = vpack.i.bf16 %v180_v6, %v182_v7  ;;  %441 = vmatpush.bf16.msra.mxu0 %v643_v30  ;;  %v655_v6 = vld [vmem:[%s987_s1 + $0x88] sm:$0xff]  ;;  %p757_p12 = pnand %p756_p11, %p864_p5 }
  0x1d   : > { %v713_v20 = vpack.i.bf16 %v179_v18, %v181_v19  ;;  %454 = vmatpush.bf16.msra.mxu1 %v651_v31  ;;  %471 = vmatpush.bf16.msra.mxu2 %v655_v6  ;;  %v639_v7 = vld [vmem:[%s987_s1 + $0x8] sm:$0xff]  ;;  %v738_v31 = vld [vmem:[%s988_s2] ss:$0 sm:$0xff] }
  0x1e   : > { %699 = vrot.lane.b32.xlu0 %v698_v8, %s803_s29  ;;  %v647_v8 = vld [vmem:[%s987_s1 + $0x48] sm:$0xff]  ;;  %p758_p13 = pneg %p757_p12 }
  0x20   : > { %442 = vmatpush.bf16.msra.mxu0 %v642_v32 }
  0x21   : > { %v204_v11 = vld.sshfl [vmem:[#allocation1 + $0x20] sm:$0xff pattern:$0x73625140]  ;;  %455 = vmatpush.bf16.msra.mxu1 %v650_v33  ;;  %472 = vmatpush.bf16.msra.mxu2 %v654_v9 }
  0x22   : > { %207 = vst [vmem:[#allocation1 + $0x20] ss:$4 sm:$0xff] %v174_v4  ;;  %v201_v12 = vld.sshfl [vmem:[#allocation1] sm:$0xff pattern:$0x73625140] }
  0x23   : > { %205 = vst [vmem:[#allocation1] ss:$4 sm:$0xff] %v173_v10 }
  0x24   : > { %443 = vmatpush.bf16.msra.mxu0 %v641_v36 }
  0x25   : > { %456 = vmatpush.bf16.msra.mxu1 %v649_v37 }
  0x28   : > { %444 = vmatpush.bf16.msra.mxu0 %v640_v40 }
  0x29   : > { %v208_v13 = vld.sshfl [vmem:[#allocation1 + $0x20] sm:$0xff pattern:$0x73625140]  ;;  %457 = vmatpush.bf16.msra.mxu1 %v648_v41 }
  0x2a   : > { %224 = vst [vmem:[#allocation1 + $0x20] ss:$4 sm:$0xff] %v172_v3  ;;  %v206_v14 = vld.sshfl [vmem:[#allocation1] sm:$0xff pattern:$0x73625140] }
  0x2b   : > { %221 = vst [vmem:[#allocation1] ss:$4 sm:$0xff] %v171_v5 }
  0x2c   : > { %445 = vmatpush.bf16.msra.mxu0 %v639_v7 }
  0x2d   : > { %458 = vmatpush.bf16.msra.mxu1 %v647_v8 }
  0x31   : > { %v225_v15 = vld.sshfl [vmem:[#allocation1 + $0x20] sm:$0xff pattern:$0x73625140] }
  0x32   : > { %v708_v16 = vpack.i.bf16 %v225_v15, %v204_v11  ;;  %228 = vst [vmem:[#allocation1 + $0x20] ss:$4 sm:$0xff] %v174_v4  ;;  %v222_v17 = vld.sshfl [vmem:[#allocation1] sm:$0xff pattern:$0x73625140] }
  0x33   : > { %226 = vst [vmem:[#allocation1] ss:$4 sm:$0xff] %v173_v10  ;;  %v723_v25 = vpack.i.bf16 %v222_v17, %v201_v12  ;;  %v638_v10 = vld [vmem:[%s987_s1] sm:$0xff] }
  0x34   : > { %709 = vrot.lane.b32.xlu1 %v708_v16, %s804_s30  ;;  %v646_v11 = vld [vmem:[%s987_s1 + $0x40] sm:$0xff]  ;;  %446 = vmatpush.bf16.msra.mxu0 %v638_v10 }
  0x35   : > { %459 = vmatpush.bf16.msra.mxu1 %v646_v11 }
  0x39   : > { %v229_v21 = vld.sshfl [vmem:[#allocation1 + $0x20] sm:$0xff pattern:$0x73625140] }
  0x3a   : > { %v703_v22 = vpack.i.bf16 %v229_v21, %v208_v13  ;;  %v227_v23 = vld.sshfl [vmem:[#allocation1] sm:$0xff pattern:$0x73625140] }
  0x3b   : > { %v718_v24 = vpack.i.bf16 %v227_v23, %v206_v14 }
  0x3c   : > { %704 = vrot.lane.b32.xlu0 %v703_v22, %s804_s30  ;;  %714 = vrot.lane.b32.xlu1 %v713_v20, %s803_s29 }
  0x3d   : > { %719 = vrot.lane.b32.xlu2 %v718_v24, %s804_s30 }
  0x45   : > { %724 = vrot.lane.b32.xlu2 %v723_v25, %s804_s30  ;;  %s759_s30 = scalar_lea.hbm %s989_s3, 8 }
  0x46   : > { %p761_p1 = scmp.lt.s32.totalorder %s759_s30, %s755_s27 }
  0x48   : > { %p762_p2 = por %p761_p1, %p760_p0 }
  0x4a   : > { %p763_p3 = pnand %p762_p2, %p758_p13 }
  0x90   : > { %v700_v35 = vpop.permute.xlu0 %699 }
  0x91   : > { %v702_v39 = vunpack.i.h.bf16 %v700_v35  ;;  %v701_v45 = vunpack.i.l.bf16 %v700_v35 }
  0x93   : > { %v197_v43 = vsel %vm195_vm0, 0.0, %v702_v39  ;;  %v199_v56 = vsel %vm195_vm0, 0.0, %v701_v45 }
  0x97   : > { %v720_v34 = vpop.permute.xlu2 %719 }
  0x98   : > { %v721_v57 = vunpack.i.l.bf16 %v720_v34  ;;  %v722_v58 = vunpack.i.h.bf16 %v720_v34 }
  0x9f   : > { %v725_v44 = vpop.permute.xlu2 %724 }
  0xa0   : > { %v727_v50 = vunpack.i.h.bf16 %v725_v44  ;;  %v726_v51 = vunpack.i.l.bf16 %v725_v44 }
  0xa6   : > { %v710_v38 = vpop.permute.xlu1 %709 }
  0xa7   : > { %v711_v42 = vunpack.i.l.bf16 %v710_v38  ;;  %v712_v46 = vunpack.i.h.bf16 %v710_v38 }
  0xa9   : > { %v244_v47 = vsel %vm242_vm1, %v197_v43, %v711_v42 }
  0xaa   : > { %v249_v0 = vsel %vm247_vm2, %v244_v47, %v712_v46 }
  0xae   : > { %v705_v48 = vpop.permute.xlu0 %704  ;;  %v715_v49 = vpop.permute.xlu1 %714 }
  0xaf   : > { %v707_v52 = vunpack.i.h.bf16 %v705_v48  ;;  %v706_v53 = vunpack.i.l.bf16 %v705_v48  ;;  %v717_v54 = vunpack.i.h.bf16 %v715_v49  ;;  %v716_v55 = vunpack.i.l.bf16 %v715_v49 }
  0xb1   : > { %v246_v59 = vsel %vm242_vm1, %v199_v56, %v706_v53  ;;  %v196_v60 = vsel %vm195_vm0, 0.0, %v717_v54  ;;  %v198_v61 = vsel %vm195_vm0, 0.0, %v716_v55 }
  0xb2   : > { %v245_v62 = vsel %vm242_vm1, %v198_v61, %v721_v57  ;;  %v243_v63 = vsel %vm242_vm1, %v196_v60, %v726_v51  ;;  %v251_v1 = vsel %vm247_vm2, %v246_v59, %v707_v52 }
  0xb3   : > { %v728_v2 = vpack.i.bf16 %v249_v0, %v251_v1  ;;  %v248_v3 = vsel %vm247_vm2, %v243_v63, %v727_v50  ;;  %v250_v4 = vsel %vm247_vm2, %v245_v62, %v722_v58 }
  0xb4   : > { %v733_v5 = vpack.i.bf16 %v248_v3, %v250_v4 }
  0xb5   : > { %729 = vrot.lane.b32.xlu0 %v728_v2, %s805_s11 }
  0xb6   : > { %734 = vrot.lane.b32.xlu1 %v733_v5, %s803_s29 }
 0x127   : > { %v730_v12 = vpop.permute.xlu0 %729 }
 0x128   : > { %v731_v13 = vunpack.i.l.bf16 %v730_v12  ;;  %v735_v14 = vpop.permute.xlu1 %734  ;;  %v732_v15 = vunpack.i.h.bf16 %v730_v12 }
 0x129   : > { %v737_v16 = vunpack.i.h.bf16 %v735_v14  ;;  %v736_v17 = vunpack.i.l.bf16 %v735_v14 }
 0x12a   : > { %v277_v18 = vrot.slane %v731_v13, 6 }
 0x12b   : > { %v271_v19 = vsel %vm260_vm3, %v249_v0, %v736_v17  ;;  %v272_v20 = vsel %vm247_vm2, %v736_v17, %v731_v13  ;;  %v261_v24 = vsel %vm260_vm3, 0.0, %v737_v16  ;;  %v262_v26 = vsel %vm247_vm2, %v737_v16, %v732_v15 }
 0x12c   : > { %v275_v21 = vrot.slane %v271_v19, 6  ;;  %v276_v22 = vrot.slane %v272_v20, 6  ;;  %v284_v23 = vsel %vm281_vm4, %v732_v15, %v277_v18 }
 0x12d   : > { %v287_v25 = vpack.c.bf16 %v284_v23, %v284_v23 }
 0x12e   : > { %v282_v27 = vsel %vm281_vm4, %v261_v24, %v275_v21  ;;  %v283_v28 = vsel %vm281_vm4, %v262_v26, %v276_v22 }
 0x12f   : > { %633 = vmatmul.msk.bf16.vlgmr.msra.gmra.mxu2 %vm242_vm1, %v287_v25  ;;  %v285_v29 = vpack.c.bf16 %v282_v27, %v282_v27  ;;  %v286_v30 = vpack.c.bf16 %v283_v28, %v283_v28 }
 0x131   : > { %447 = vmatmul.bf16.vlgmr.msra.gmra.mxu0 %v285_v29  ;;  %460 = vmatmul.bf16.vlgmr.msra.gmra.mxu1 %v286_v30 }
 0x1ae   : > { %v448_v32 = vpop.f32.mrf.mxu0  ;;  %v461_v33 = vpop.f32.mrf.mxu1 }
 0x1af   : > { %v449_v34 = vadd.f32 %v738_v31, %v448_v32 }
 0x1b1   : > { %v462_v35 = vadd.f32 %v461_v33, %v449_v34 }
 0x1b2   : > { %v474_v36 = vpop.f32.mrf.mxu2 }
 0x1b3   : > { %v475_v37 = vadd.f32 %v474_v36, %v462_v35 }
 0x1b5   : > { %479 = vst.msk [vmem:[%s161_s20] sm:$0xf] %vm478_vm5, %v475_v37 }
 0x1b6   : > { %v450_v38 = vpop.f32.mrf.mxu0  ;;  %v463_v39 = vpop.f32.mrf.mxu1 }
 0x1b7   : > { %766 = shalt.err (!%p763_p3)
}
 0x1b8   : > { %656 = dma.vmem_to_hbm [thread:$0]  (%p864_p5), %s494_s24, 64, %s496_s25, %s481_s16  }
 0x1ba   : > { %v476_v40 = vpop.f32.mrf.mxu2 }
 0x1bb PF: > { %p662_p4 = scmp.ge.s32.totalorder %s801_s15, 2  ;;  %s507_s6 = sand.u32 1, %s789_s12  }
 0x1bc   : > { %s508_s7 = scalar_lea.sflag [#allocation3], %s507_s6 }
 0x1bd   : > { %p659_p7 = pnand %p662_p4, %p868_p6 }
 0x1bf   : > { %p660_p8 = pneg %p659_p7 }
 0x1c1   : > { %784 = dma.done.wait (%p660_p8), %s508_s7, 64  }
 0x1c2   : > { %786 = vsyncadd (%p660_p8), %s508_s7, 4294967232  ;;  %p13_p9 = scmp.ge.s32.totalorder %s851_s18, 4   ;;  %s992_s12 = smov %s793_s13 }
 0x1c3   : > { %s993_s13 = smov %s797_s14  ;;  %s994_s14 = smov %s862_s21 }
 0x1c4   : > { %s995_s15 = smov %s851_s18  ;;  %15 = sbr.rel (!%p13_p9) target bundleno = 3 (0x3), region = 69 }
 0x1c9   :  { %514 = vsyncpa [#allocation3], 1 }
 0x1ca   :  { %516 = vsyncpa [#allocation3 + $0x1], 1 }

</bundles_post_ra>
